<compile_context>
chip_gen: v5e
topology: v5e:2x2
jax: 0.10.0
libtpu: 0.0.40
codegen_flags: <defaults>
</compile_context>

<pallas_src>
import functools

import jax
import jax.numpy as jnp
from jax.experimental import pallas as pl
from jax.experimental.pallas import tpu as pltpu

CHANNELS = 3     # RGB
HIDDEN = 32      # synthetic stand-in bottleneck width
LANE = 128       # TPU lane width
CHUNK_ROWS = 8   # 8 sublanes x 128 lanes = one f32 vreg per channel plane


def pipeline_kernel(params_ref, x_ref, o_ref, *, channels, hidden, chunk_rows):
    # params_ref: flat f32 SMEM vector [w1f (C*H), b1f (H), w2f (H*C), b2f (C)]
    #             with the `img*2 - 1` / `(y+1)/2` affines already folded in.
    # x_ref/o_ref: (channels, tile_rows, 128) f32 VMEM pixel tile — lane-dense
    #              per-channel planes.
    #
    # TODO(synk): Preprocess.preprocess_to_conditions and the pretrained
    # StyleGAN3 generator (g_model from network_pkl) have no in-script
    # definition; replaced by this deterministic per-pixel MLP stand-in.
    tile_rows = x_ref.shape[1]
    chunk = min(chunk_rows, tile_rows)

    w1_off = 0
    b1_off = channels * hidden
    w2_off = b1_off + hidden
    b2_off = w2_off + hidden * channels

    # Hoist all ~230 scalar SMEM weight/bias reads out of the chunk loop.
    w1 = [[params_ref[w1_off + c * hidden + j] for c in range(channels)]
          for j in range(hidden)]
    b1 = [params_ref[b1_off + j] for j in range(hidden)]
    w2 = [[params_ref[w2_off + j * channels + c] for j in range(hidden)]
          for c in range(channels)]
    b2 = [params_ref[b2_off + c] for c in range(channels)]

    def do_chunk(r0, rows):
        # VPU-only per-pixel MLP on register-resident (rows, 128) planes; the
        # hidden activation never touches VMEM.  Static slices -> pure views.
        xs = [x_ref[c, r0:r0 + rows, :] for c in range(channels)]
        hs = []
        for j in range(hidden):
            hj = xs[0] * w1[j][0]
            for c in range(1, channels):
                hj = hj + xs[c] * w1[j][c]
            hs.append(jnp.maximum(hj + b1[j], 0.0))
        for c in range(channels):
            yc = hs[0] * w2[c][0]
            for j in range(1, hidden):
                yc = yc + hs[j] * w2[c][j]
            o_ref[c, r0:r0 + rows, :] = jnp.clip(yc + b2[c], 0.0, 1.0)

    # Statically unrolled chunk loop (trip count <= 16) + static ragged tail.
    n_full = tile_rows // chunk
    for ci in range(n_full):
        do_chunk(ci * chunk, chunk)
    rem = tile_rows - n_full * chunk
    if rem:
        do_chunk(n_full * chunk, rem)


def _pick_tile_rows(num_rows, max_rows=128, target_tiles=8):
    """Largest row tile (multiple of 8, <= max_rows) dividing num_rows that
    yields >= target_tiles grid steps (v7x megacore overlap); falls back to
    the largest such divisor, then None (caller pads)."""
    if num_rows <= max_rows:
        return num_rows          # single tile; full-extent block is legal
    best = None
    for d in range(max_rows, CHUNK_ROWS - 1, -CHUNK_ROWS):
        if num_rows % d == 0:
            if best is None:
                best = d
            if num_rows // d >= target_tiles:
                return d
    return best


def pipeline_forward(img_nchw, w1, b1, w2, b2):
    """img_nchw: float32 (N, C, H, W) in [0, 1] (ToTensor output).
    Returns float32 (N, C, H, W) in [0, 1] (denormalized, clamped)."""
    N, C, H, W = img_nchw.shape
    HID = w1.shape[1]
    P = N * H * W

    # NCHW -> (C, N*H*W).  For N == 1 (the module's PIL-image path) the
    # size-1 moveaxis is layout-free, so this is a pure reshape.
    x = jnp.moveaxis(img_nchw, 1, 0).reshape(C, P)

    # Fold the input normalization (x*2 - 1) and output denorm ((y+1)/2) into
    # the tiny weights once, then flatten into one SMEM parameter vector:
    #   (2x-1)@w1 + b1       == x @ (2*w1) + (b1 - sum(w1, axis=0))
    #   ((h@w2 + b2) + 1)/2  == h @ (0.5*w2) + (0.5*b2 + 0.5)
    w1f = 2.0 * w1                                   # (C, HID)
    b1f = b1[0] - jnp.sum(w1, axis=0)                # (HID,)
    w2f = 0.5 * w2                                   # (HID, C)
    b2f = 0.5 * b2[0] + 0.5                          # (C,)
    params = jnp.concatenate(
        [w1f.reshape(-1), b1f.reshape(-1), w2f.reshape(-1), b2f.reshape(-1)]
    ).astype(jnp.float32)

    # Lane-dense layout (C, rows, 128): each channel plane fills whole vregs.
    rows = pl.cdiv(P, LANE)
    tile_rows = _pick_tile_rows(rows)
    if tile_rows is None:
        tile_rows = min(rows, 128)
        rows_pad = pl.cdiv(rows, tile_rows) * tile_rows
    else:
        rows_pad = rows
    P_pad = rows_pad * LANE
    if P_pad != P:
        # TODO(synk): rare fallback (pixel count not a multiple of 128, or an
        # awkward row count) costs one extra pad + slice pass over the image;
        # common image sizes (256/512/1024 px) never hit this.
        x = jnp.pad(x, ((0, 0), (0, P_pad - P)))
    x = x.reshape(C, rows_pad, LANE)
    n_tiles = rows_pad // tile_rows

    kernel = functools.partial(
        pipeline_kernel, channels=C, hidden=HID, chunk_rows=CHUNK_ROWS)

    out = pl.pallas_call(
        kernel,
        out_shape=jax.ShapeDtypeStruct((C, rows_pad, LANE), jnp.float32),
        grid=(n_tiles,),
        in_specs=[
            # Tiny parameter vector, copied once into SMEM (no per-step DMA).
            pl.BlockSpec(memory_space=pltpu.MemorySpace.SMEM),
            # Lane-dense pixel tile.
            pl.BlockSpec((C, tile_rows, LANE), lambda i: (0, i, 0)),
        ],
        out_specs=pl.BlockSpec((C, tile_rows, LANE), lambda i: (0, i, 0)),
        compiler_params=pltpu.CompilerParams(
            dimension_semantics=("parallel",)),
        cost_estimate=pl.CostEstimate(
            flops=4 * C * HID * P_pad,          # two C<->HID layers, 2 flops/MAC
            transcendentals=0,
            bytes_accessed=2 * C * 4 * P_pad),  # f32 in + f32 out
    )(params, x)

    out = out.reshape(C, P_pad)
    if P_pad != P:
        out = out[:, :P]
    out = out.reshape(C, N, H, W)
    return jnp.moveaxis(out, 0, 1)


def reference_forward(img_nchw, w1, b1, w2, b2):
    hi = jax.lax.Precision.HIGHEST
    x = jnp.transpose(img_nchw, (0, 2, 3, 1)) * 2.0 - 1.0        # NHWC, normalized
    h = jnp.maximum(
        jnp.einsum("nhwc,cd->nhwd", x, w1, precision=hi) + b1[0], 0.0)
    y = jnp.einsum("nhwd,dc->nhwc", h, w2, precision=hi) + b2[0]
    y = jnp.clip((y + 1.0) * 0.5, 0.0, 1.0)
    return jnp.transpose(y, (0, 3, 1, 2))


if __name__ == "__main__":
    key = jax.random.PRNGKey(0)
    k_img, k_w1, k_b1, k_w2, k_b2 = jax.random.split(key, 5)

    # Small stand-in for the 256x256 RGB PIL input.
    N, C, H, W = 1, CHANNELS, 16, 16
    img = jax.random.uniform(k_img, (N, C, H, W), dtype=jnp.float32)  # in [0,1]

    # Deterministic synthetic parameters for the generator stand-in.
    w1 = jax.random.normal(k_w1, (C, HIDDEN), dtype=jnp.float32) * 0.3
    b1 = jax.random.normal(k_b1, (1, HIDDEN), dtype=jnp.float32) * 0.1
    w2 = jax.random.normal(k_w2, (HIDDEN, C), dtype=jnp.float32) * 0.3
    b2 = jax.random.normal(k_b2, (1, C), dtype=jnp.float32) * 0.1

    out = jax.block_until_ready(pipeline_forward(img, w1, b1, w2, b2))
    ref = jax.block_until_ready(reference_forward(img, w1, b1, w2, b2))
    assert out.shape == (N, C, H, W)
    err = float(jnp.max(jnp.abs(out - ref)))
    assert err < 1e-4, err

    # Exercise the multi-chunk + ragged-tail path (rows=15 -> 8 + 7).
    img2 = jax.random.uniform(k_img, (1, C, 24, 80), dtype=jnp.float32)
    out2 = jax.block_until_ready(pipeline_forward(img2, w1, b1, w2, b2))
    ref2 = reference_forward(img2, w1, b1, w2, b2)
    err2 = float(jnp.max(jnp.abs(out2 - ref2)))
    assert err2 < 1e-4, err2

    # Exercise the rare ragged-pixel (pad/slice) fallback path.
    img3 = jax.random.uniform(k_img, (1, C, 6, 10), dtype=jnp.float32)
    out3 = jax.block_until_ready(pipeline_forward(img3, w1, b1, w2, b2))
    ref3 = reference_forward(img3, w1, b1, w2, b2)
    err3 = float(jnp.max(jnp.abs(out3 - ref3)))
    assert err3 < 1e-4, err3

    print("KERNEL_OK")
</pallas_src>

<mosaic_0001>
module attributes {stable_mosaic.version = 11 : i64} {
  func.func @pipeline_kernel(%arg0: i32, %arg1: memref<227xf32, #tpu.memory_space<smem>>, %arg2: memref<3x2x128xf32, #tpu.memory_space<vmem>>, %arg3: memref<3x2x128xf32, #tpu.memory_space<vmem>>) attributes {dimension_semantics = [#tpu.dimension_semantics<parallel>], iteration_bounds = array<i64: 1>, scalar_prefetch = 0 : i64, scratch_operands = 0 : i64, tpu.core_type = #tpu.core_type<tc>, window_params = [{transform_indices = @transform_0, window_bounds = array<i64: 227>}, {transform_indices = @transform_1, window_bounds = array<i64: 3, 2, 128>}, {transform_indices = @transform_2, window_bounds = array<i64: 3, 2, 128>}]} {
    %c0 = arith.constant 0 : index
    %0 = memref.load %arg1[%c0] : memref<227xf32, #tpu.memory_space<smem>>
    %c32 = arith.constant 32 : index
    %1 = memref.load %arg1[%c32] : memref<227xf32, #tpu.memory_space<smem>>
    %c64 = arith.constant 64 : index
    %2 = memref.load %arg1[%c64] : memref<227xf32, #tpu.memory_space<smem>>
    %c1 = arith.constant 1 : index
    %3 = memref.load %arg1[%c1] : memref<227xf32, #tpu.memory_space<smem>>
    %c33 = arith.constant 33 : index
    %4 = memref.load %arg1[%c33] : memref<227xf32, #tpu.memory_space<smem>>
    %c65 = arith.constant 65 : index
    %5 = memref.load %arg1[%c65] : memref<227xf32, #tpu.memory_space<smem>>
    %c2 = arith.constant 2 : index
    %6 = memref.load %arg1[%c2] : memref<227xf32, #tpu.memory_space<smem>>
    %c34 = arith.constant 34 : index
    %7 = memref.load %arg1[%c34] : memref<227xf32, #tpu.memory_space<smem>>
    %c66 = arith.constant 66 : index
    %8 = memref.load %arg1[%c66] : memref<227xf32, #tpu.memory_space<smem>>
    %c3 = arith.constant 3 : index
    %9 = memref.load %arg1[%c3] : memref<227xf32, #tpu.memory_space<smem>>
    %c35 = arith.constant 35 : index
    %10 = memref.load %arg1[%c35] : memref<227xf32, #tpu.memory_space<smem>>
    %c67 = arith.constant 67 : index
    %11 = memref.load %arg1[%c67] : memref<227xf32, #tpu.memory_space<smem>>
    %c4 = arith.constant 4 : index
    %12 = memref.load %arg1[%c4] : memref<227xf32, #tpu.memory_space<smem>>
    %c36 = arith.constant 36 : index
    %13 = memref.load %arg1[%c36] : memref<227xf32, #tpu.memory_space<smem>>
    %c68 = arith.constant 68 : index
    %14 = memref.load %arg1[%c68] : memref<227xf32, #tpu.memory_space<smem>>
    %c5 = arith.constant 5 : index
    %15 = memref.load %arg1[%c5] : memref<227xf32, #tpu.memory_space<smem>>
    %c37 = arith.constant 37 : index
    %16 = memref.load %arg1[%c37] : memref<227xf32, #tpu.memory_space<smem>>
    %c69 = arith.constant 69 : index
    %17 = memref.load %arg1[%c69] : memref<227xf32, #tpu.memory_space<smem>>
    %c6 = arith.constant 6 : index
    %18 = memref.load %arg1[%c6] : memref<227xf32, #tpu.memory_space<smem>>
    %c38 = arith.constant 38 : index
    %19 = memref.load %arg1[%c38] : memref<227xf32, #tpu.memory_space<smem>>
    %c70 = arith.constant 70 : index
    %20 = memref.load %arg1[%c70] : memref<227xf32, #tpu.memory_space<smem>>
    %c7 = arith.constant 7 : index
    %21 = memref.load %arg1[%c7] : memref<227xf32, #tpu.memory_space<smem>>
    %c39 = arith.constant 39 : index
    %22 = memref.load %arg1[%c39] : memref<227xf32, #tpu.memory_space<smem>>
    %c71 = arith.constant 71 : index
    %23 = memref.load %arg1[%c71] : memref<227xf32, #tpu.memory_space<smem>>
    %c8 = arith.constant 8 : index
    %24 = memref.load %arg1[%c8] : memref<227xf32, #tpu.memory_space<smem>>
    %c40 = arith.constant 40 : index
    %25 = memref.load %arg1[%c40] : memref<227xf32, #tpu.memory_space<smem>>
    %c72 = arith.constant 72 : index
    %26 = memref.load %arg1[%c72] : memref<227xf32, #tpu.memory_space<smem>>
    %c9 = arith.constant 9 : index
    %27 = memref.load %arg1[%c9] : memref<227xf32, #tpu.memory_space<smem>>
    %c41 = arith.constant 41 : index
    %28 = memref.load %arg1[%c41] : memref<227xf32, #tpu.memory_space<smem>>
    %c73 = arith.constant 73 : index
    %29 = memref.load %arg1[%c73] : memref<227xf32, #tpu.memory_space<smem>>
    %c10 = arith.constant 10 : index
    %30 = memref.load %arg1[%c10] : memref<227xf32, #tpu.memory_space<smem>>
    %c42 = arith.constant 42 : index
    %31 = memref.load %arg1[%c42] : memref<227xf32, #tpu.memory_space<smem>>
    %c74 = arith.constant 74 : index
    %32 = memref.load %arg1[%c74] : memref<227xf32, #tpu.memory_space<smem>>
    %c11 = arith.constant 11 : index
    %33 = memref.load %arg1[%c11] : memref<227xf32, #tpu.memory_space<smem>>
    %c43 = arith.constant 43 : index
    %34 = memref.load %arg1[%c43] : memref<227xf32, #tpu.memory_space<smem>>
    %c75 = arith.constant 75 : index
    %35 = memref.load %arg1[%c75] : memref<227xf32, #tpu.memory_space<smem>>
    %c12 = arith.constant 12 : index
    %36 = memref.load %arg1[%c12] : memref<227xf32, #tpu.memory_space<smem>>
    %c44 = arith.constant 44 : index
    %37 = memref.load %arg1[%c44] : memref<227xf32, #tpu.memory_space<smem>>
    %c76 = arith.constant 76 : index
    %38 = memref.load %arg1[%c76] : memref<227xf32, #tpu.memory_space<smem>>
    %c13 = arith.constant 13 : index
    %39 = memref.load %arg1[%c13] : memref<227xf32, #tpu.memory_space<smem>>
    %c45 = arith.constant 45 : index
    %40 = memref.load %arg1[%c45] : memref<227xf32, #tpu.memory_space<smem>>
    %c77 = arith.constant 77 : index
    %41 = memref.load %arg1[%c77] : memref<227xf32, #tpu.memory_space<smem>>
    %c14 = arith.constant 14 : index
    %42 = memref.load %arg1[%c14] : memref<227xf32, #tpu.memory_space<smem>>
    %c46 = arith.constant 46 : index
    %43 = memref.load %arg1[%c46] : memref<227xf32, #tpu.memory_space<smem>>
    %c78 = arith.constant 78 : index
    %44 = memref.load %arg1[%c78] : memref<227xf32, #tpu.memory_space<smem>>
    %c15 = arith.constant 15 : index
    %45 = memref.load %arg1[%c15] : memref<227xf32, #tpu.memory_space<smem>>
    %c47 = arith.constant 47 : index
    %46 = memref.load %arg1[%c47] : memref<227xf32, #tpu.memory_space<smem>>
    %c79 = arith.constant 79 : index
    %47 = memref.load %arg1[%c79] : memref<227xf32, #tpu.memory_space<smem>>
    %c16 = arith.constant 16 : index
    %48 = memref.load %arg1[%c16] : memref<227xf32, #tpu.memory_space<smem>>
    %c48 = arith.constant 48 : index
    %49 = memref.load %arg1[%c48] : memref<227xf32, #tpu.memory_space<smem>>
    %c80 = arith.constant 80 : index
    %50 = memref.load %arg1[%c80] : memref<227xf32, #tpu.memory_space<smem>>
    %c17 = arith.constant 17 : index
    %51 = memref.load %arg1[%c17] : memref<227xf32, #tpu.memory_space<smem>>
    %c49 = arith.constant 49 : index
    %52 = memref.load %arg1[%c49] : memref<227xf32, #tpu.memory_space<smem>>
    %c81 = arith.constant 81 : index
    %53 = memref.load %arg1[%c81] : memref<227xf32, #tpu.memory_space<smem>>
    %c18 = arith.constant 18 : index
    %54 = memref.load %arg1[%c18] : memref<227xf32, #tpu.memory_space<smem>>
    %c50 = arith.constant 50 : index
    %55 = memref.load %arg1[%c50] : memref<227xf32, #tpu.memory_space<smem>>
    %c82 = arith.constant 82 : index
    %56 = memref.load %arg1[%c82] : memref<227xf32, #tpu.memory_space<smem>>
    %c19 = arith.constant 19 : index
    %57 = memref.load %arg1[%c19] : memref<227xf32, #tpu.memory_space<smem>>
    %c51 = arith.constant 51 : index
    %58 = memref.load %arg1[%c51] : memref<227xf32, #tpu.memory_space<smem>>
    %c83 = arith.constant 83 : index
    %59 = memref.load %arg1[%c83] : memref<227xf32, #tpu.memory_space<smem>>
    %c20 = arith.constant 20 : index
    %60 = memref.load %arg1[%c20] : memref<227xf32, #tpu.memory_space<smem>>
    %c52 = arith.constant 52 : index
    %61 = memref.load %arg1[%c52] : memref<227xf32, #tpu.memory_space<smem>>
    %c84 = arith.constant 84 : index
    %62 = memref.load %arg1[%c84] : memref<227xf32, #tpu.memory_space<smem>>
    %c21 = arith.constant 21 : index
    %63 = memref.load %arg1[%c21] : memref<227xf32, #tpu.memory_space<smem>>
    %c53 = arith.constant 53 : index
    %64 = memref.load %arg1[%c53] : memref<227xf32, #tpu.memory_space<smem>>
    %c85 = arith.constant 85 : index
    %65 = memref.load %arg1[%c85] : memref<227xf32, #tpu.memory_space<smem>>
    %c22 = arith.constant 22 : index
    %66 = memref.load %arg1[%c22] : memref<227xf32, #tpu.memory_space<smem>>
    %c54 = arith.constant 54 : index
    %67 = memref.load %arg1[%c54] : memref<227xf32, #tpu.memory_space<smem>>
    %c86 = arith.constant 86 : index
    %68 = memref.load %arg1[%c86] : memref<227xf32, #tpu.memory_space<smem>>
    %c23 = arith.constant 23 : index
    %69 = memref.load %arg1[%c23] : memref<227xf32, #tpu.memory_space<smem>>
    %c55 = arith.constant 55 : index
    %70 = memref.load %arg1[%c55] : memref<227xf32, #tpu.memory_space<smem>>
    %c87 = arith.constant 87 : index
    %71 = memref.load %arg1[%c87] : memref<227xf32, #tpu.memory_space<smem>>
    %c24 = arith.constant 24 : index
    %72 = memref.load %arg1[%c24] : memref<227xf32, #tpu.memory_space<smem>>
    %c56 = arith.constant 56 : index
    %73 = memref.load %arg1[%c56] : memref<227xf32, #tpu.memory_space<smem>>
    %c88 = arith.constant 88 : index
    %74 = memref.load %arg1[%c88] : memref<227xf32, #tpu.memory_space<smem>>
    %c25 = arith.constant 25 : index
    %75 = memref.load %arg1[%c25] : memref<227xf32, #tpu.memory_space<smem>>
    %c57 = arith.constant 57 : index
    %76 = memref.load %arg1[%c57] : memref<227xf32, #tpu.memory_space<smem>>
    %c89 = arith.constant 89 : index
    %77 = memref.load %arg1[%c89] : memref<227xf32, #tpu.memory_space<smem>>
    %c26 = arith.constant 26 : index
    %78 = memref.load %arg1[%c26] : memref<227xf32, #tpu.memory_space<smem>>
    %c58 = arith.constant 58 : index
    %79 = memref.load %arg1[%c58] : memref<227xf32, #tpu.memory_space<smem>>
    %c90 = arith.constant 90 : index
    %80 = memref.load %arg1[%c90] : memref<227xf32, #tpu.memory_space<smem>>
    %c27 = arith.constant 27 : index
    %81 = memref.load %arg1[%c27] : memref<227xf32, #tpu.memory_space<smem>>
    %c59 = arith.constant 59 : index
    %82 = memref.load %arg1[%c59] : memref<227xf32, #tpu.memory_space<smem>>
    %c91 = arith.constant 91 : index
    %83 = memref.load %arg1[%c91] : memref<227xf32, #tpu.memory_space<smem>>
    %c28 = arith.constant 28 : index
    %84 = memref.load %arg1[%c28] : memref<227xf32, #tpu.memory_space<smem>>
    %c60 = arith.constant 60 : index
    %85 = memref.load %arg1[%c60] : memref<227xf32, #tpu.memory_space<smem>>
    %c92 = arith.constant 92 : index
    %86 = memref.load %arg1[%c92] : memref<227xf32, #tpu.memory_space<smem>>
    %c29 = arith.constant 29 : index
    %87 = memref.load %arg1[%c29] : memref<227xf32, #tpu.memory_space<smem>>
    %c61 = arith.constant 61 : index
    %88 = memref.load %arg1[%c61] : memref<227xf32, #tpu.memory_space<smem>>
    %c93 = arith.constant 93 : index
    %89 = memref.load %arg1[%c93] : memref<227xf32, #tpu.memory_space<smem>>
    %c30 = arith.constant 30 : index
    %90 = memref.load %arg1[%c30] : memref<227xf32, #tpu.memory_space<smem>>
    %c62 = arith.constant 62 : index
    %91 = memref.load %arg1[%c62] : memref<227xf32, #tpu.memory_space<smem>>
    %c94 = arith.constant 94 : index
    %92 = memref.load %arg1[%c94] : memref<227xf32, #tpu.memory_space<smem>>
    %c31 = arith.constant 31 : index
    %93 = memref.load %arg1[%c31] : memref<227xf32, #tpu.memory_space<smem>>
    %c63 = arith.constant 63 : index
    %94 = memref.load %arg1[%c63] : memref<227xf32, #tpu.memory_space<smem>>
    %c95 = arith.constant 95 : index
    %95 = memref.load %arg1[%c95] : memref<227xf32, #tpu.memory_space<smem>>
    %c96 = arith.constant 96 : index
    %96 = memref.load %arg1[%c96] : memref<227xf32, #tpu.memory_space<smem>>
    %c97 = arith.constant 97 : index
    %97 = memref.load %arg1[%c97] : memref<227xf32, #tpu.memory_space<smem>>
    %c98 = arith.constant 98 : index
    %98 = memref.load %arg1[%c98] : memref<227xf32, #tpu.memory_space<smem>>
    %c99 = arith.constant 99 : index
    %99 = memref.load %arg1[%c99] : memref<227xf32, #tpu.memory_space<smem>>
    %c100 = arith.constant 100 : index
    %100 = memref.load %arg1[%c100] : memref<227xf32, #tpu.memory_space<smem>>
    %c101 = arith.constant 101 : index
    %101 = memref.load %arg1[%c101] : memref<227xf32, #tpu.memory_space<smem>>
    %c102 = arith.constant 102 : index
    %102 = memref.load %arg1[%c102] : memref<227xf32, #tpu.memory_space<smem>>
    %c103 = arith.constant 103 : index
    %103 = memref.load %arg1[%c103] : memref<227xf32, #tpu.memory_space<smem>>
    %c104 = arith.constant 104 : index
    %104 = memref.load %arg1[%c104] : memref<227xf32, #tpu.memory_space<smem>>
    %c105 = arith.constant 105 : index
    %105 = memref.load %arg1[%c105] : memref<227xf32, #tpu.memory_space<smem>>
    %c106 = arith.constant 106 : index
    %106 = memref.load %arg1[%c106] : memref<227xf32, #tpu.memory_space<smem>>
    %c107 = arith.constant 107 : index
    %107 = memref.load %arg1[%c107] : memref<227xf32, #tpu.memory_space<smem>>
    %c108 = arith.constant 108 : index
    %108 = memref.load %arg1[%c108] : memref<227xf32, #tpu.memory_space<smem>>
    %c109 = arith.constant 109 : index
    %109 = memref.load %arg1[%c109] : memref<227xf32, #tpu.memory_space<smem>>
    %c110 = arith.constant 110 : index
    %110 = memref.load %arg1[%c110] : memref<227xf32, #tpu.memory_space<smem>>
    %c111 = arith.constant 111 : index
    %111 = memref.load %arg1[%c111] : memref<227xf32, #tpu.memory_space<smem>>
    %c112 = arith.constant 112 : index
    %112 = memref.load %arg1[%c112] : memref<227xf32, #tpu.memory_space<smem>>
    %c113 = arith.constant 113 : index
    %113 = memref.load %arg1[%c113] : memref<227xf32, #tpu.memory_space<smem>>
    %c114 = arith.constant 114 : index
    %114 = memref.load %arg1[%c114] : memref<227xf32, #tpu.memory_space<smem>>
    %c115 = arith.constant 115 : index
    %115 = memref.load %arg1[%c115] : memref<227xf32, #tpu.memory_space<smem>>
    %c116 = arith.constant 116 : index
    %116 = memref.load %arg1[%c116] : memref<227xf32, #tpu.memory_space<smem>>
    %c117 = arith.constant 117 : index
    %117 = memref.load %arg1[%c117] : memref<227xf32, #tpu.memory_space<smem>>
    %c118 = arith.constant 118 : index
    %118 = memref.load %arg1[%c118] : memref<227xf32, #tpu.memory_space<smem>>
    %c119 = arith.constant 119 : index
    %119 = memref.load %arg1[%c119] : memref<227xf32, #tpu.memory_space<smem>>
    %c120 = arith.constant 120 : index
    %120 = memref.load %arg1[%c120] : memref<227xf32, #tpu.memory_space<smem>>
    %c121 = arith.constant 121 : index
    %121 = memref.load %arg1[%c121] : memref<227xf32, #tpu.memory_space<smem>>
    %c122 = arith.constant 122 : index
    %122 = memref.load %arg1[%c122] : memref<227xf32, #tpu.memory_space<smem>>
    %c123 = arith.constant 123 : index
    %123 = memref.load %arg1[%c123] : memref<227xf32, #tpu.memory_space<smem>>
    %c124 = arith.constant 124 : index
    %124 = memref.load %arg1[%c124] : memref<227xf32, #tpu.memory_space<smem>>
    %c125 = arith.constant 125 : index
    %125 = memref.load %arg1[%c125] : memref<227xf32, #tpu.memory_space<smem>>
    %c126 = arith.constant 126 : index
    %126 = memref.load %arg1[%c126] : memref<227xf32, #tpu.memory_space<smem>>
    %c127 = arith.constant 127 : index
    %127 = memref.load %arg1[%c127] : memref<227xf32, #tpu.memory_space<smem>>
    %c128 = arith.constant 128 : index
    %128 = memref.load %arg1[%c128] : memref<227xf32, #tpu.memory_space<smem>>
    %c131 = arith.constant 131 : index
    %129 = memref.load %arg1[%c131] : memref<227xf32, #tpu.memory_space<smem>>
    %c134 = arith.constant 134 : index
    %130 = memref.load %arg1[%c134] : memref<227xf32, #tpu.memory_space<smem>>
    %c137 = arith.constant 137 : index
    %131 = memref.load %arg1[%c137] : memref<227xf32, #tpu.memory_space<smem>>
    %c140 = arith.constant 140 : index
    %132 = memref.load %arg1[%c140] : memref<227xf32, #tpu.memory_space<smem>>
    %c143 = arith.constant 143 : index
    %133 = memref.load %arg1[%c143] : memref<227xf32, #tpu.memory_space<smem>>
    %c146 = arith.constant 146 : index
    %134 = memref.load %arg1[%c146] : memref<227xf32, #tpu.memory_space<smem>>
    %c149 = arith.constant 149 : index
    %135 = memref.load %arg1[%c149] : memref<227xf32, #tpu.memory_space<smem>>
    %c152 = arith.constant 152 : index
    %136 = memref.load %arg1[%c152] : memref<227xf32, #tpu.memory_space<smem>>
    %c155 = arith.constant 155 : index
    %137 = memref.load %arg1[%c155] : memref<227xf32, #tpu.memory_space<smem>>
    %c158 = arith.constant 158 : index
    %138 = memref.load %arg1[%c158] : memref<227xf32, #tpu.memory_space<smem>>
    %c161 = arith.constant 161 : index
    %139 = memref.load %arg1[%c161] : memref<227xf32, #tpu.memory_space<smem>>
    %c164 = arith.constant 164 : index
    %140 = memref.load %arg1[%c164] : memref<227xf32, #tpu.memory_space<smem>>
    %c167 = arith.constant 167 : index
    %141 = memref.load %arg1[%c167] : memref<227xf32, #tpu.memory_space<smem>>
    %c170 = arith.constant 170 : index
    %142 = memref.load %arg1[%c170] : memref<227xf32, #tpu.memory_space<smem>>
    %c173 = arith.constant 173 : index
    %143 = memref.load %arg1[%c173] : memref<227xf32, #tpu.memory_space<smem>>
    %c176 = arith.constant 176 : index
    %144 = memref.load %arg1[%c176] : memref<227xf32, #tpu.memory_space<smem>>
    %c179 = arith.constant 179 : index
    %145 = memref.load %arg1[%c179] : memref<227xf32, #tpu.memory_space<smem>>
    %c182 = arith.constant 182 : index
    %146 = memref.load %arg1[%c182] : memref<227xf32, #tpu.memory_space<smem>>
    %c185 = arith.constant 185 : index
    %147 = memref.load %arg1[%c185] : memref<227xf32, #tpu.memory_space<smem>>
    %c188 = arith.constant 188 : index
    %148 = memref.load %arg1[%c188] : memref<227xf32, #tpu.memory_space<smem>>
    %c191 = arith.constant 191 : index
    %149 = memref.load %arg1[%c191] : memref<227xf32, #tpu.memory_space<smem>>
    %c194 = arith.constant 194 : index
    %150 = memref.load %arg1[%c194] : memref<227xf32, #tpu.memory_space<smem>>
    %c197 = arith.constant 197 : index
    %151 = memref.load %arg1[%c197] : memref<227xf32, #tpu.memory_space<smem>>
    %c200 = arith.constant 200 : index
    %152 = memref.load %arg1[%c200] : memref<227xf32, #tpu.memory_space<smem>>
    %c203 = arith.constant 203 : index
    %153 = memref.load %arg1[%c203] : memref<227xf32, #tpu.memory_space<smem>>
    %c206 = arith.constant 206 : index
    %154 = memref.load %arg1[%c206] : memref<227xf32, #tpu.memory_space<smem>>
    %c209 = arith.constant 209 : index
    %155 = memref.load %arg1[%c209] : memref<227xf32, #tpu.memory_space<smem>>
    %c212 = arith.constant 212 : index
    %156 = memref.load %arg1[%c212] : memref<227xf32, #tpu.memory_space<smem>>
    %c215 = arith.constant 215 : index
    %157 = memref.load %arg1[%c215] : memref<227xf32, #tpu.memory_space<smem>>
    %c218 = arith.constant 218 : index
    %158 = memref.load %arg1[%c218] : memref<227xf32, #tpu.memory_space<smem>>
    %c221 = arith.constant 221 : index
    %159 = memref.load %arg1[%c221] : memref<227xf32, #tpu.memory_space<smem>>
    %c129 = arith.constant 129 : index
    %160 = memref.load %arg1[%c129] : memref<227xf32, #tpu.memory_space<smem>>
    %c132 = arith.constant 132 : index
    %161 = memref.load %arg1[%c132] : memref<227xf32, #tpu.memory_space<smem>>
    %c135 = arith.constant 135 : index
    %162 = memref.load %arg1[%c135] : memref<227xf32, #tpu.memory_space<smem>>
    %c138 = arith.constant 138 : index
    %163 = memref.load %arg1[%c138] : memref<227xf32, #tpu.memory_space<smem>>
    %c141 = arith.constant 141 : index
    %164 = memref.load %arg1[%c141] : memref<227xf32, #tpu.memory_space<smem>>
    %c144 = arith.constant 144 : index
    %165 = memref.load %arg1[%c144] : memref<227xf32, #tpu.memory_space<smem>>
    %c147 = arith.constant 147 : index
    %166 = memref.load %arg1[%c147] : memref<227xf32, #tpu.memory_space<smem>>
    %c150 = arith.constant 150 : index
    %167 = memref.load %arg1[%c150] : memref<227xf32, #tpu.memory_space<smem>>
    %c153 = arith.constant 153 : index
    %168 = memref.load %arg1[%c153] : memref<227xf32, #tpu.memory_space<smem>>
    %c156 = arith.constant 156 : index
    %169 = memref.load %arg1[%c156] : memref<227xf32, #tpu.memory_space<smem>>
    %c159 = arith.constant 159 : index
    %170 = memref.load %arg1[%c159] : memref<227xf32, #tpu.memory_space<smem>>
    %c162 = arith.constant 162 : index
    %171 = memref.load %arg1[%c162] : memref<227xf32, #tpu.memory_space<smem>>
    %c165 = arith.constant 165 : index
    %172 = memref.load %arg1[%c165] : memref<227xf32, #tpu.memory_space<smem>>
    %c168 = arith.constant 168 : index
    %173 = memref.load %arg1[%c168] : memref<227xf32, #tpu.memory_space<smem>>
    %c171 = arith.constant 171 : index
    %174 = memref.load %arg1[%c171] : memref<227xf32, #tpu.memory_space<smem>>
    %c174 = arith.constant 174 : index
    %175 = memref.load %arg1[%c174] : memref<227xf32, #tpu.memory_space<smem>>
    %c177 = arith.constant 177 : index
    %176 = memref.load %arg1[%c177] : memref<227xf32, #tpu.memory_space<smem>>
    %c180 = arith.constant 180 : index
    %177 = memref.load %arg1[%c180] : memref<227xf32, #tpu.memory_space<smem>>
    %c183 = arith.constant 183 : index
    %178 = memref.load %arg1[%c183] : memref<227xf32, #tpu.memory_space<smem>>
    %c186 = arith.constant 186 : index
    %179 = memref.load %arg1[%c186] : memref<227xf32, #tpu.memory_space<smem>>
    %c189 = arith.constant 189 : index
    %180 = memref.load %arg1[%c189] : memref<227xf32, #tpu.memory_space<smem>>
    %c192 = arith.constant 192 : index
    %181 = memref.load %arg1[%c192] : memref<227xf32, #tpu.memory_space<smem>>
    %c195 = arith.constant 195 : index
    %182 = memref.load %arg1[%c195] : memref<227xf32, #tpu.memory_space<smem>>
    %c198 = arith.constant 198 : index
    %183 = memref.load %arg1[%c198] : memref<227xf32, #tpu.memory_space<smem>>
    %c201 = arith.constant 201 : index
    %184 = memref.load %arg1[%c201] : memref<227xf32, #tpu.memory_space<smem>>
    %c204 = arith.constant 204 : index
    %185 = memref.load %arg1[%c204] : memref<227xf32, #tpu.memory_space<smem>>
    %c207 = arith.constant 207 : index
    %186 = memref.load %arg1[%c207] : memref<227xf32, #tpu.memory_space<smem>>
    %c210 = arith.constant 210 : index
    %187 = memref.load %arg1[%c210] : memref<227xf32, #tpu.memory_space<smem>>
    %c213 = arith.constant 213 : index
    %188 = memref.load %arg1[%c213] : memref<227xf32, #tpu.memory_space<smem>>
    %c216 = arith.constant 216 : index
    %189 = memref.load %arg1[%c216] : memref<227xf32, #tpu.memory_space<smem>>
    %c219 = arith.constant 219 : index
    %190 = memref.load %arg1[%c219] : memref<227xf32, #tpu.memory_space<smem>>
    %c222 = arith.constant 222 : index
    %191 = memref.load %arg1[%c222] : memref<227xf32, #tpu.memory_space<smem>>
    %c130 = arith.constant 130 : index
    %192 = memref.load %arg1[%c130] : memref<227xf32, #tpu.memory_space<smem>>
    %c133 = arith.constant 133 : index
    %193 = memref.load %arg1[%c133] : memref<227xf32, #tpu.memory_space<smem>>
    %c136 = arith.constant 136 : index
    %194 = memref.load %arg1[%c136] : memref<227xf32, #tpu.memory_space<smem>>
    %c139 = arith.constant 139 : index
    %195 = memref.load %arg1[%c139] : memref<227xf32, #tpu.memory_space<smem>>
    %c142 = arith.constant 142 : index
    %196 = memref.load %arg1[%c142] : memref<227xf32, #tpu.memory_space<smem>>
    %c145 = arith.constant 145 : index
    %197 = memref.load %arg1[%c145] : memref<227xf32, #tpu.memory_space<smem>>
    %c148 = arith.constant 148 : index
    %198 = memref.load %arg1[%c148] : memref<227xf32, #tpu.memory_space<smem>>
    %c151 = arith.constant 151 : index
    %199 = memref.load %arg1[%c151] : memref<227xf32, #tpu.memory_space<smem>>
    %c154 = arith.constant 154 : index
    %200 = memref.load %arg1[%c154] : memref<227xf32, #tpu.memory_space<smem>>
    %c157 = arith.constant 157 : index
    %201 = memref.load %arg1[%c157] : memref<227xf32, #tpu.memory_space<smem>>
    %c160 = arith.constant 160 : index
    %202 = memref.load %arg1[%c160] : memref<227xf32, #tpu.memory_space<smem>>
    %c163 = arith.constant 163 : index
    %203 = memref.load %arg1[%c163] : memref<227xf32, #tpu.memory_space<smem>>
    %c166 = arith.constant 166 : index
    %204 = memref.load %arg1[%c166] : memref<227xf32, #tpu.memory_space<smem>>
    %c169 = arith.constant 169 : index
    %205 = memref.load %arg1[%c169] : memref<227xf32, #tpu.memory_space<smem>>
    %c172 = arith.constant 172 : index
    %206 = memref.load %arg1[%c172] : memref<227xf32, #tpu.memory_space<smem>>
    %c175 = arith.constant 175 : index
    %207 = memref.load %arg1[%c175] : memref<227xf32, #tpu.memory_space<smem>>
    %c178 = arith.constant 178 : index
    %208 = memref.load %arg1[%c178] : memref<227xf32, #tpu.memory_space<smem>>
    %c181 = arith.constant 181 : index
    %209 = memref.load %arg1[%c181] : memref<227xf32, #tpu.memory_space<smem>>
    %c184 = arith.constant 184 : index
    %210 = memref.load %arg1[%c184] : memref<227xf32, #tpu.memory_space<smem>>
    %c187 = arith.constant 187 : index
    %211 = memref.load %arg1[%c187] : memref<227xf32, #tpu.memory_space<smem>>
    %c190 = arith.constant 190 : index
    %212 = memref.load %arg1[%c190] : memref<227xf32, #tpu.memory_space<smem>>
    %c193 = arith.constant 193 : index
    %213 = memref.load %arg1[%c193] : memref<227xf32, #tpu.memory_space<smem>>
    %c196 = arith.constant 196 : index
    %214 = memref.load %arg1[%c196] : memref<227xf32, #tpu.memory_space<smem>>
    %c199 = arith.constant 199 : index
    %215 = memref.load %arg1[%c199] : memref<227xf32, #tpu.memory_space<smem>>
    %c202 = arith.constant 202 : index
    %216 = memref.load %arg1[%c202] : memref<227xf32, #tpu.memory_space<smem>>
    %c205 = arith.constant 205 : index
    %217 = memref.load %arg1[%c205] : memref<227xf32, #tpu.memory_space<smem>>
    %c208 = arith.constant 208 : index
    %218 = memref.load %arg1[%c208] : memref<227xf32, #tpu.memory_space<smem>>
    %c211 = arith.constant 211 : index
    %219 = memref.load %arg1[%c211] : memref<227xf32, #tpu.memory_space<smem>>
    %c214 = arith.constant 214 : index
    %220 = memref.load %arg1[%c214] : memref<227xf32, #tpu.memory_space<smem>>
    %c217 = arith.constant 217 : index
    %221 = memref.load %arg1[%c217] : memref<227xf32, #tpu.memory_space<smem>>
    %c220 = arith.constant 220 : index
    %222 = memref.load %arg1[%c220] : memref<227xf32, #tpu.memory_space<smem>>
    %c223 = arith.constant 223 : index
    %223 = memref.load %arg1[%c223] : memref<227xf32, #tpu.memory_space<smem>>
    %c224 = arith.constant 224 : index
    %224 = memref.load %arg1[%c224] : memref<227xf32, #tpu.memory_space<smem>>
    %c225 = arith.constant 225 : index
    %225 = memref.load %arg1[%c225] : memref<227xf32, #tpu.memory_space<smem>>
    %c226 = arith.constant 226 : index
    %226 = memref.load %arg1[%c226] : memref<227xf32, #tpu.memory_space<smem>>
    %c0_0 = arith.constant 0 : index
    %c0_1 = arith.constant 0 : index
    %c0_2 = arith.constant 0 : index
    %227 = vector.load %arg2[%c0_0, %c0_1, %c0_2] : memref<3x2x128xf32, #tpu.memory_space<vmem>>, vector<1x2x128xf32>
    %228 = vector.shape_cast %227 : vector<1x2x128xf32> to vector<2x128xf32>
    %c1_3 = arith.constant 1 : index
    %c0_4 = arith.constant 0 : index
    %c0_5 = arith.constant 0 : index
    %229 = vector.load %arg2[%c1_3, %c0_4, %c0_5] : memref<3x2x128xf32, #tpu.memory_space<vmem>>, vector<1x2x128xf32>
    %230 = vector.shape_cast %229 : vector<1x2x128xf32> to vector<2x128xf32>
    %c2_6 = arith.constant 2 : index
    %c0_7 = arith.constant 0 : index
    %c0_8 = arith.constant 0 : index
    %231 = vector.load %arg2[%c2_6, %c0_7, %c0_8] : memref<3x2x128xf32, #tpu.memory_space<vmem>>, vector<1x2x128xf32>
    %232 = vector.shape_cast %231 : vector<1x2x128xf32> to vector<2x128xf32>
    %233 = vector.broadcast %0 : f32 to vector<2x128xf32>
    %234 = arith.mulf %228, %233 : vector<2x128xf32>
    %235 = vector.broadcast %1 : f32 to vector<2x128xf32>
    %236 = arith.mulf %230, %235 : vector<2x128xf32>
    %237 = arith.addf %234, %236 : vector<2x128xf32>
    %238 = vector.broadcast %2 : f32 to vector<2x128xf32>
    %239 = arith.mulf %232, %238 : vector<2x128xf32>
    %240 = arith.addf %237, %239 : vector<2x128xf32>
    %241 = vector.broadcast %96 : f32 to vector<2x128xf32>
    %242 = arith.addf %240, %241 : vector<2x128xf32>
    %cst = arith.constant 0.000000e+00 : f32
    %243 = vector.broadcast %cst : f32 to vector<2x128xf32>
    %244 = arith.maximumf %242, %243 : vector<2x128xf32>
    %245 = vector.broadcast %3 : f32 to vector<2x128xf32>
    %246 = arith.mulf %228, %245 : vector<2x128xf32>
    %247 = vector.broadcast %4 : f32 to vector<2x128xf32>
    %248 = arith.mulf %230, %247 : vector<2x128xf32>
    %249 = arith.addf %246, %248 : vector<2x128xf32>
    %250 = vector.broadcast %5 : f32 to vector<2x128xf32>
    %251 = arith.mulf %232, %250 : vector<2x128xf32>
    %252 = arith.addf %249, %251 : vector<2x128xf32>
    %253 = vector.broadcast %97 : f32 to vector<2x128xf32>
    %254 = arith.addf %252, %253 : vector<2x128xf32>
    %cst_9 = arith.constant 0.000000e+00 : f32
    %255 = vector.broadcast %cst_9 : f32 to vector<2x128xf32>
    %256 = arith.maximumf %254, %255 : vector<2x128xf32>
    %257 = vector.broadcast %6 : f32 to vector<2x128xf32>
    %258 = arith.mulf %228, %257 : vector<2x128xf32>
    %259 = vector.broadcast %7 : f32 to vector<2x128xf32>
    %260 = arith.mulf %230, %259 : vector<2x128xf32>
    %261 = arith.addf %258, %260 : vector<2x128xf32>
    %262 = vector.broadcast %8 : f32 to vector<2x128xf32>
    %263 = arith.mulf %232, %262 : vector<2x128xf32>
    %264 = arith.addf %261, %263 : vector<2x128xf32>
    %265 = vector.broadcast %98 : f32 to vector<2x128xf32>
    %266 = arith.addf %264, %265 : vector<2x128xf32>
    %cst_10 = arith.constant 0.000000e+00 : f32
    %267 = vector.broadcast %cst_10 : f32 to vector<2x128xf32>
    %268 = arith.maximumf %266, %267 : vector<2x128xf32>
    %269 = vector.broadcast %9 : f32 to vector<2x128xf32>
    %270 = arith.mulf %228, %269 : vector<2x128xf32>
    %271 = vector.broadcast %10 : f32 to vector<2x128xf32>
    %272 = arith.mulf %230, %271 : vector<2x128xf32>
    %273 = arith.addf %270, %272 : vector<2x128xf32>
    %274 = vector.broadcast %11 : f32 to vector<2x128xf32>
    %275 = arith.mulf %232, %274 : vector<2x128xf32>
    %276 = arith.addf %273, %275 : vector<2x128xf32>
    %277 = vector.broadcast %99 : f32 to vector<2x128xf32>
    %278 = arith.addf %276, %277 : vector<2x128xf32>
    %cst_11 = arith.constant 0.000000e+00 : f32
    %279 = vector.broadcast %cst_11 : f32 to vector<2x128xf32>
    %280 = arith.maximumf %278, %279 : vector<2x128xf32>
    %281 = vector.broadcast %12 : f32 to vector<2x128xf32>
    %282 = arith.mulf %228, %281 : vector<2x128xf32>
    %283 = vector.broadcast %13 : f32 to vector<2x128xf32>
    %284 = arith.mulf %230, %283 : vector<2x128xf32>
    %285 = arith.addf %282, %284 : vector<2x128xf32>
    %286 = vector.broadcast %14 : f32 to vector<2x128xf32>
    %287 = arith.mulf %232, %286 : vector<2x128xf32>
    %288 = arith.addf %285, %287 : vector<2x128xf32>
    %289 = vector.broadcast %100 : f32 to vector<2x128xf32>
    %290 = arith.addf %288, %289 : vector<2x128xf32>
    %cst_12 = arith.constant 0.000000e+00 : f32
    %291 = vector.broadcast %cst_12 : f32 to vector<2x128xf32>
    %292 = arith.maximumf %290, %291 : vector<2x128xf32>
    %293 = vector.broadcast %15 : f32 to vector<2x128xf32>
    %294 = arith.mulf %228, %293 : vector<2x128xf32>
    %295 = vector.broadcast %16 : f32 to vector<2x128xf32>
    %296 = arith.mulf %230, %295 : vector<2x128xf32>
    %297 = arith.addf %294, %296 : vector<2x128xf32>
    %298 = vector.broadcast %17 : f32 to vector<2x128xf32>
    %299 = arith.mulf %232, %298 : vector<2x128xf32>
    %300 = arith.addf %297, %299 : vector<2x128xf32>
    %301 = vector.broadcast %101 : f32 to vector<2x128xf32>
    %302 = arith.addf %300, %301 : vector<2x128xf32>
    %cst_13 = arith.constant 0.000000e+00 : f32
    %303 = vector.broadcast %cst_13 : f32 to vector<2x128xf32>
    %304 = arith.maximumf %302, %303 : vector<2x128xf32>
    %305 = vector.broadcast %18 : f32 to vector<2x128xf32>
    %306 = arith.mulf %228, %305 : vector<2x128xf32>
    %307 = vector.broadcast %19 : f32 to vector<2x128xf32>
    %308 = arith.mulf %230, %307 : vector<2x128xf32>
    %309 = arith.addf %306, %308 : vector<2x128xf32>
    %310 = vector.broadcast %20 : f32 to vector<2x128xf32>
    %311 = arith.mulf %232, %310 : vector<2x128xf32>
    %312 = arith.addf %309, %311 : vector<2x128xf32>
    %313 = vector.broadcast %102 : f32 to vector<2x128xf32>
    %314 = arith.addf %312, %313 : vector<2x128xf32>
    %cst_14 = arith.constant 0.000000e+00 : f32
    %315 = vector.broadcast %cst_14 : f32 to vector<2x128xf32>
    %316 = arith.maximumf %314, %315 : vector<2x128xf32>
    %317 = vector.broadcast %21 : f32 to vector<2x128xf32>
    %318 = arith.mulf %228, %317 : vector<2x128xf32>
    %319 = vector.broadcast %22 : f32 to vector<2x128xf32>
    %320 = arith.mulf %230, %319 : vector<2x128xf32>
    %321 = arith.addf %318, %320 : vector<2x128xf32>
    %322 = vector.broadcast %23 : f32 to vector<2x128xf32>
    %323 = arith.mulf %232, %322 : vector<2x128xf32>
    %324 = arith.addf %321, %323 : vector<2x128xf32>
    %325 = vector.broadcast %103 : f32 to vector<2x128xf32>
    %326 = arith.addf %324, %325 : vector<2x128xf32>
    %cst_15 = arith.constant 0.000000e+00 : f32
    %327 = vector.broadcast %cst_15 : f32 to vector<2x128xf32>
    %328 = arith.maximumf %326, %327 : vector<2x128xf32>
    %329 = vector.broadcast %24 : f32 to vector<2x128xf32>
    %330 = arith.mulf %228, %329 : vector<2x128xf32>
    %331 = vector.broadcast %25 : f32 to vector<2x128xf32>
    %332 = arith.mulf %230, %331 : vector<2x128xf32>
    %333 = arith.addf %330, %332 : vector<2x128xf32>
    %334 = vector.broadcast %26 : f32 to vector<2x128xf32>
    %335 = arith.mulf %232, %334 : vector<2x128xf32>
    %336 = arith.addf %333, %335 : vector<2x128xf32>
    %337 = vector.broadcast %104 : f32 to vector<2x128xf32>
    %338 = arith.addf %336, %337 : vector<2x128xf32>
    %cst_16 = arith.constant 0.000000e+00 : f32
    %339 = vector.broadcast %cst_16 : f32 to vector<2x128xf32>
    %340 = arith.maximumf %338, %339 : vector<2x128xf32>
    %341 = vector.broadcast %27 : f32 to vector<2x128xf32>
    %342 = arith.mulf %228, %341 : vector<2x128xf32>
    %343 = vector.broadcast %28 : f32 to vector<2x128xf32>
    %344 = arith.mulf %230, %343 : vector<2x128xf32>
    %345 = arith.addf %342, %344 : vector<2x128xf32>
    %346 = vector.broadcast %29 : f32 to vector<2x128xf32>
    %347 = arith.mulf %232, %346 : vector<2x128xf32>
    %348 = arith.addf %345, %347 : vector<2x128xf32>
    %349 = vector.broadcast %105 : f32 to vector<2x128xf32>
    %350 = arith.addf %348, %349 : vector<2x128xf32>
    %cst_17 = arith.constant 0.000000e+00 : f32
    %351 = vector.broadcast %cst_17 : f32 to vector<2x128xf32>
    %352 = arith.maximumf %350, %351 : vector<2x128xf32>
    %353 = vector.broadcast %30 : f32 to vector<2x128xf32>
    %354 = arith.mulf %228, %353 : vector<2x128xf32>
    %355 = vector.broadcast %31 : f32 to vector<2x128xf32>
    %356 = arith.mulf %230, %355 : vector<2x128xf32>
    %357 = arith.addf %354, %356 : vector<2x128xf32>
    %358 = vector.broadcast %32 : f32 to vector<2x128xf32>
    %359 = arith.mulf %232, %358 : vector<2x128xf32>
    %360 = arith.addf %357, %359 : vector<2x128xf32>
    %361 = vector.broadcast %106 : f32 to vector<2x128xf32>
    %362 = arith.addf %360, %361 : vector<2x128xf32>
    %cst_18 = arith.constant 0.000000e+00 : f32
    %363 = vector.broadcast %cst_18 : f32 to vector<2x128xf32>
    %364 = arith.maximumf %362, %363 : vector<2x128xf32>
    %365 = vector.broadcast %33 : f32 to vector<2x128xf32>
    %366 = arith.mulf %228, %365 : vector<2x128xf32>
    %367 = vector.broadcast %34 : f32 to vector<2x128xf32>
    %368 = arith.mulf %230, %367 : vector<2x128xf32>
    %369 = arith.addf %366, %368 : vector<2x128xf32>
    %370 = vector.broadcast %35 : f32 to vector<2x128xf32>
    %371 = arith.mulf %232, %370 : vector<2x128xf32>
    %372 = arith.addf %369, %371 : vector<2x128xf32>
    %373 = vector.broadcast %107 : f32 to vector<2x128xf32>
    %374 = arith.addf %372, %373 : vector<2x128xf32>
    %cst_19 = arith.constant 0.000000e+00 : f32
    %375 = vector.broadcast %cst_19 : f32 to vector<2x128xf32>
    %376 = arith.maximumf %374, %375 : vector<2x128xf32>
    %377 = vector.broadcast %36 : f32 to vector<2x128xf32>
    %378 = arith.mulf %228, %377 : vector<2x128xf32>
    %379 = vector.broadcast %37 : f32 to vector<2x128xf32>
    %380 = arith.mulf %230, %379 : vector<2x128xf32>
    %381 = arith.addf %378, %380 : vector<2x128xf32>
    %382 = vector.broadcast %38 : f32 to vector<2x128xf32>
    %383 = arith.mulf %232, %382 : vector<2x128xf32>
    %384 = arith.addf %381, %383 : vector<2x128xf32>
    %385 = vector.broadcast %108 : f32 to vector<2x128xf32>
    %386 = arith.addf %384, %385 : vector<2x128xf32>
    %cst_20 = arith.constant 0.000000e+00 : f32
    %387 = vector.broadcast %cst_20 : f32 to vector<2x128xf32>
    %388 = arith.maximumf %386, %387 : vector<2x128xf32>
    %389 = vector.broadcast %39 : f32 to vector<2x128xf32>
    %390 = arith.mulf %228, %389 : vector<2x128xf32>
    %391 = vector.broadcast %40 : f32 to vector<2x128xf32>
    %392 = arith.mulf %230, %391 : vector<2x128xf32>
    %393 = arith.addf %390, %392 : vector<2x128xf32>
    %394 = vector.broadcast %41 : f32 to vector<2x128xf32>
    %395 = arith.mulf %232, %394 : vector<2x128xf32>
    %396 = arith.addf %393, %395 : vector<2x128xf32>
    %397 = vector.broadcast %109 : f32 to vector<2x128xf32>
    %398 = arith.addf %396, %397 : vector<2x128xf32>
    %cst_21 = arith.constant 0.000000e+00 : f32
    %399 = vector.broadcast %cst_21 : f32 to vector<2x128xf32>
    %400 = arith.maximumf %398, %399 : vector<2x128xf32>
    %401 = vector.broadcast %42 : f32 to vector<2x128xf32>
    %402 = arith.mulf %228, %401 : vector<2x128xf32>
    %403 = vector.broadcast %43 : f32 to vector<2x128xf32>
    %404 = arith.mulf %230, %403 : vector<2x128xf32>
    %405 = arith.addf %402, %404 : vector<2x128xf32>
    %406 = vector.broadcast %44 : f32 to vector<2x128xf32>
    %407 = arith.mulf %232, %406 : vector<2x128xf32>
    %408 = arith.addf %405, %407 : vector<2x128xf32>
    %409 = vector.broadcast %110 : f32 to vector<2x128xf32>
    %410 = arith.addf %408, %409 : vector<2x128xf32>
    %cst_22 = arith.constant 0.000000e+00 : f32
    %411 = vector.broadcast %cst_22 : f32 to vector<2x128xf32>
    %412 = arith.maximumf %410, %411 : vector<2x128xf32>
    %413 = vector.broadcast %45 : f32 to vector<2x128xf32>
    %414 = arith.mulf %228, %413 : vector<2x128xf32>
    %415 = vector.broadcast %46 : f32 to vector<2x128xf32>
    %416 = arith.mulf %230, %415 : vector<2x128xf32>
    %417 = arith.addf %414, %416 : vector<2x128xf32>
    %418 = vector.broadcast %47 : f32 to vector<2x128xf32>
    %419 = arith.mulf %232, %418 : vector<2x128xf32>
    %420 = arith.addf %417, %419 : vector<2x128xf32>
    %421 = vector.broadcast %111 : f32 to vector<2x128xf32>
    %422 = arith.addf %420, %421 : vector<2x128xf32>
    %cst_23 = arith.constant 0.000000e+00 : f32
    %423 = vector.broadcast %cst_23 : f32 to vector<2x128xf32>
    %424 = arith.maximumf %422, %423 : vector<2x128xf32>
    %425 = vector.broadcast %48 : f32 to vector<2x128xf32>
    %426 = arith.mulf %228, %425 : vector<2x128xf32>
    %427 = vector.broadcast %49 : f32 to vector<2x128xf32>
    %428 = arith.mulf %230, %427 : vector<2x128xf32>
    %429 = arith.addf %426, %428 : vector<2x128xf32>
    %430 = vector.broadcast %50 : f32 to vector<2x128xf32>
    %431 = arith.mulf %232, %430 : vector<2x128xf32>
    %432 = arith.addf %429, %431 : vector<2x128xf32>
    %433 = vector.broadcast %112 : f32 to vector<2x128xf32>
    %434 = arith.addf %432, %433 : vector<2x128xf32>
    %cst_24 = arith.constant 0.000000e+00 : f32
    %435 = vector.broadcast %cst_24 : f32 to vector<2x128xf32>
    %436 = arith.maximumf %434, %435 : vector<2x128xf32>
    %437 = vector.broadcast %51 : f32 to vector<2x128xf32>
    %438 = arith.mulf %228, %437 : vector<2x128xf32>
    %439 = vector.broadcast %52 : f32 to vector<2x128xf32>
    %440 = arith.mulf %230, %439 : vector<2x128xf32>
    %441 = arith.addf %438, %440 : vector<2x128xf32>
    %442 = vector.broadcast %53 : f32 to vector<2x128xf32>
    %443 = arith.mulf %232, %442 : vector<2x128xf32>
    %444 = arith.addf %441, %443 : vector<2x128xf32>
    %445 = vector.broadcast %113 : f32 to vector<2x128xf32>
    %446 = arith.addf %444, %445 : vector<2x128xf32>
    %cst_25 = arith.constant 0.000000e+00 : f32
    %447 = vector.broadcast %cst_25 : f32 to vector<2x128xf32>
    %448 = arith.maximumf %446, %447 : vector<2x128xf32>
    %449 = vector.broadcast %54 : f32 to vector<2x128xf32>
    %450 = arith.mulf %228, %449 : vector<2x128xf32>
    %451 = vector.broadcast %55 : f32 to vector<2x128xf32>
    %452 = arith.mulf %230, %451 : vector<2x128xf32>
    %453 = arith.addf %450, %452 : vector<2x128xf32>
    %454 = vector.broadcast %56 : f32 to vector<2x128xf32>
    %455 = arith.mulf %232, %454 : vector<2x128xf32>
    %456 = arith.addf %453, %455 : vector<2x128xf32>
    %457 = vector.broadcast %114 : f32 to vector<2x128xf32>
    %458 = arith.addf %456, %457 : vector<2x128xf32>
    %cst_26 = arith.constant 0.000000e+00 : f32
    %459 = vector.broadcast %cst_26 : f32 to vector<2x128xf32>
    %460 = arith.maximumf %458, %459 : vector<2x128xf32>
    %461 = vector.broadcast %57 : f32 to vector<2x128xf32>
    %462 = arith.mulf %228, %461 : vector<2x128xf32>
    %463 = vector.broadcast %58 : f32 to vector<2x128xf32>
    %464 = arith.mulf %230, %463 : vector<2x128xf32>
    %465 = arith.addf %462, %464 : vector<2x128xf32>
    %466 = vector.broadcast %59 : f32 to vector<2x128xf32>
    %467 = arith.mulf %232, %466 : vector<2x128xf32>
    %468 = arith.addf %465, %467 : vector<2x128xf32>
    %469 = vector.broadcast %115 : f32 to vector<2x128xf32>
    %470 = arith.addf %468, %469 : vector<2x128xf32>
    %cst_27 = arith.constant 0.000000e+00 : f32
    %471 = vector.broadcast %cst_27 : f32 to vector<2x128xf32>
    %472 = arith.maximumf %470, %471 : vector<2x128xf32>
    %473 = vector.broadcast %60 : f32 to vector<2x128xf32>
    %474 = arith.mulf %228, %473 : vector<2x128xf32>
    %475 = vector.broadcast %61 : f32 to vector<2x128xf32>
    %476 = arith.mulf %230, %475 : vector<2x128xf32>
    %477 = arith.addf %474, %476 : vector<2x128xf32>
    %478 = vector.broadcast %62 : f32 to vector<2x128xf32>
    %479 = arith.mulf %232, %478 : vector<2x128xf32>
    %480 = arith.addf %477, %479 : vector<2x128xf32>
    %481 = vector.broadcast %116 : f32 to vector<2x128xf32>
    %482 = arith.addf %480, %481 : vector<2x128xf32>
    %cst_28 = arith.constant 0.000000e+00 : f32
    %483 = vector.broadcast %cst_28 : f32 to vector<2x128xf32>
    %484 = arith.maximumf %482, %483 : vector<2x128xf32>
    %485 = vector.broadcast %63 : f32 to vector<2x128xf32>
    %486 = arith.mulf %228, %485 : vector<2x128xf32>
    %487 = vector.broadcast %64 : f32 to vector<2x128xf32>
    %488 = arith.mulf %230, %487 : vector<2x128xf32>
    %489 = arith.addf %486, %488 : vector<2x128xf32>
    %490 = vector.broadcast %65 : f32 to vector<2x128xf32>
    %491 = arith.mulf %232, %490 : vector<2x128xf32>
    %492 = arith.addf %489, %491 : vector<2x128xf32>
    %493 = vector.broadcast %117 : f32 to vector<2x128xf32>
    %494 = arith.addf %492, %493 : vector<2x128xf32>
    %cst_29 = arith.constant 0.000000e+00 : f32
    %495 = vector.broadcast %cst_29 : f32 to vector<2x128xf32>
    %496 = arith.maximumf %494, %495 : vector<2x128xf32>
    %497 = vector.broadcast %66 : f32 to vector<2x128xf32>
    %498 = arith.mulf %228, %497 : vector<2x128xf32>
    %499 = vector.broadcast %67 : f32 to vector<2x128xf32>
    %500 = arith.mulf %230, %499 : vector<2x128xf32>
    %501 = arith.addf %498, %500 : vector<2x128xf32>
    %502 = vector.broadcast %68 : f32 to vector<2x128xf32>
    %503 = arith.mulf %232, %502 : vector<2x128xf32>
    %504 = arith.addf %501, %503 : vector<2x128xf32>
    %505 = vector.broadcast %118 : f32 to vector<2x128xf32>
    %506 = arith.addf %504, %505 : vector<2x128xf32>
    %cst_30 = arith.constant 0.000000e+00 : f32
    %507 = vector.broadcast %cst_30 : f32 to vector<2x128xf32>
    %508 = arith.maximumf %506, %507 : vector<2x128xf32>
    %509 = vector.broadcast %69 : f32 to vector<2x128xf32>
    %510 = arith.mulf %228, %509 : vector<2x128xf32>
    %511 = vector.broadcast %70 : f32 to vector<2x128xf32>
    %512 = arith.mulf %230, %511 : vector<2x128xf32>
    %513 = arith.addf %510, %512 : vector<2x128xf32>
    %514 = vector.broadcast %71 : f32 to vector<2x128xf32>
    %515 = arith.mulf %232, %514 : vector<2x128xf32>
    %516 = arith.addf %513, %515 : vector<2x128xf32>
    %517 = vector.broadcast %119 : f32 to vector<2x128xf32>
    %518 = arith.addf %516, %517 : vector<2x128xf32>
    %cst_31 = arith.constant 0.000000e+00 : f32
    %519 = vector.broadcast %cst_31 : f32 to vector<2x128xf32>
    %520 = arith.maximumf %518, %519 : vector<2x128xf32>
    %521 = vector.broadcast %72 : f32 to vector<2x128xf32>
    %522 = arith.mulf %228, %521 : vector<2x128xf32>
    %523 = vector.broadcast %73 : f32 to vector<2x128xf32>
    %524 = arith.mulf %230, %523 : vector<2x128xf32>
    %525 = arith.addf %522, %524 : vector<2x128xf32>
    %526 = vector.broadcast %74 : f32 to vector<2x128xf32>
    %527 = arith.mulf %232, %526 : vector<2x128xf32>
    %528 = arith.addf %525, %527 : vector<2x128xf32>
    %529 = vector.broadcast %120 : f32 to vector<2x128xf32>
    %530 = arith.addf %528, %529 : vector<2x128xf32>
    %cst_32 = arith.constant 0.000000e+00 : f32
    %531 = vector.broadcast %cst_32 : f32 to vector<2x128xf32>
    %532 = arith.maximumf %530, %531 : vector<2x128xf32>
    %533 = vector.broadcast %75 : f32 to vector<2x128xf32>
    %534 = arith.mulf %228, %533 : vector<2x128xf32>
    %535 = vector.broadcast %76 : f32 to vector<2x128xf32>
    %536 = arith.mulf %230, %535 : vector<2x128xf32>
    %537 = arith.addf %534, %536 : vector<2x128xf32>
    %538 = vector.broadcast %77 : f32 to vector<2x128xf32>
    %539 = arith.mulf %232, %538 : vector<2x128xf32>
    %540 = arith.addf %537, %539 : vector<2x128xf32>
    %541 = vector.broadcast %121 : f32 to vector<2x128xf32>
    %542 = arith.addf %540, %541 : vector<2x128xf32>
    %cst_33 = arith.constant 0.000000e+00 : f32
    %543 = vector.broadcast %cst_33 : f32 to vector<2x128xf32>
    %544 = arith.maximumf %542, %543 : vector<2x128xf32>
    %545 = vector.broadcast %78 : f32 to vector<2x128xf32>
    %546 = arith.mulf %228, %545 : vector<2x128xf32>
    %547 = vector.broadcast %79 : f32 to vector<2x128xf32>
    %548 = arith.mulf %230, %547 : vector<2x128xf32>
    %549 = arith.addf %546, %548 : vector<2x128xf32>
    %550 = vector.broadcast %80 : f32 to vector<2x128xf32>
    %551 = arith.mulf %232, %550 : vector<2x128xf32>
    %552 = arith.addf %549, %551 : vector<2x128xf32>
    %553 = vector.broadcast %122 : f32 to vector<2x128xf32>
    %554 = arith.addf %552, %553 : vector<2x128xf32>
    %cst_34 = arith.constant 0.000000e+00 : f32
    %555 = vector.broadcast %cst_34 : f32 to vector<2x128xf32>
    %556 = arith.maximumf %554, %555 : vector<2x128xf32>
    %557 = vector.broadcast %81 : f32 to vector<2x128xf32>
    %558 = arith.mulf %228, %557 : vector<2x128xf32>
    %559 = vector.broadcast %82 : f32 to vector<2x128xf32>
    %560 = arith.mulf %230, %559 : vector<2x128xf32>
    %561 = arith.addf %558, %560 : vector<2x128xf32>
    %562 = vector.broadcast %83 : f32 to vector<2x128xf32>
    %563 = arith.mulf %232, %562 : vector<2x128xf32>
    %564 = arith.addf %561, %563 : vector<2x128xf32>
    %565 = vector.broadcast %123 : f32 to vector<2x128xf32>
    %566 = arith.addf %564, %565 : vector<2x128xf32>
    %cst_35 = arith.constant 0.000000e+00 : f32
    %567 = vector.broadcast %cst_35 : f32 to vector<2x128xf32>
    %568 = arith.maximumf %566, %567 : vector<2x128xf32>
    %569 = vector.broadcast %84 : f32 to vector<2x128xf32>
    %570 = arith.mulf %228, %569 : vector<2x128xf32>
    %571 = vector.broadcast %85 : f32 to vector<2x128xf32>
    %572 = arith.mulf %230, %571 : vector<2x128xf32>
    %573 = arith.addf %570, %572 : vector<2x128xf32>
    %574 = vector.broadcast %86 : f32 to vector<2x128xf32>
    %575 = arith.mulf %232, %574 : vector<2x128xf32>
    %576 = arith.addf %573, %575 : vector<2x128xf32>
    %577 = vector.broadcast %124 : f32 to vector<2x128xf32>
    %578 = arith.addf %576, %577 : vector<2x128xf32>
    %cst_36 = arith.constant 0.000000e+00 : f32
    %579 = vector.broadcast %cst_36 : f32 to vector<2x128xf32>
    %580 = arith.maximumf %578, %579 : vector<2x128xf32>
    %581 = vector.broadcast %87 : f32 to vector<2x128xf32>
    %582 = arith.mulf %228, %581 : vector<2x128xf32>
    %583 = vector.broadcast %88 : f32 to vector<2x128xf32>
    %584 = arith.mulf %230, %583 : vector<2x128xf32>
    %585 = arith.addf %582, %584 : vector<2x128xf32>
    %586 = vector.broadcast %89 : f32 to vector<2x128xf32>
    %587 = arith.mulf %232, %586 : vector<2x128xf32>
    %588 = arith.addf %585, %587 : vector<2x128xf32>
    %589 = vector.broadcast %125 : f32 to vector<2x128xf32>
    %590 = arith.addf %588, %589 : vector<2x128xf32>
    %cst_37 = arith.constant 0.000000e+00 : f32
    %591 = vector.broadcast %cst_37 : f32 to vector<2x128xf32>
    %592 = arith.maximumf %590, %591 : vector<2x128xf32>
    %593 = vector.broadcast %90 : f32 to vector<2x128xf32>
    %594 = arith.mulf %228, %593 : vector<2x128xf32>
    %595 = vector.broadcast %91 : f32 to vector<2x128xf32>
    %596 = arith.mulf %230, %595 : vector<2x128xf32>
    %597 = arith.addf %594, %596 : vector<2x128xf32>
    %598 = vector.broadcast %92 : f32 to vector<2x128xf32>
    %599 = arith.mulf %232, %598 : vector<2x128xf32>
    %600 = arith.addf %597, %599 : vector<2x128xf32>
    %601 = vector.broadcast %126 : f32 to vector<2x128xf32>
    %602 = arith.addf %600, %601 : vector<2x128xf32>
    %cst_38 = arith.constant 0.000000e+00 : f32
    %603 = vector.broadcast %cst_38 : f32 to vector<2x128xf32>
    %604 = arith.maximumf %602, %603 : vector<2x128xf32>
    %605 = vector.broadcast %93 : f32 to vector<2x128xf32>
    %606 = arith.mulf %228, %605 : vector<2x128xf32>
    %607 = vector.broadcast %94 : f32 to vector<2x128xf32>
    %608 = arith.mulf %230, %607 : vector<2x128xf32>
    %609 = arith.addf %606, %608 : vector<2x128xf32>
    %610 = vector.broadcast %95 : f32 to vector<2x128xf32>
    %611 = arith.mulf %232, %610 : vector<2x128xf32>
    %612 = arith.addf %609, %611 : vector<2x128xf32>
    %613 = vector.broadcast %127 : f32 to vector<2x128xf32>
    %614 = arith.addf %612, %613 : vector<2x128xf32>
    %cst_39 = arith.constant 0.000000e+00 : f32
    %615 = vector.broadcast %cst_39 : f32 to vector<2x128xf32>
    %616 = arith.maximumf %614, %615 : vector<2x128xf32>
    %617 = vector.broadcast %128 : f32 to vector<2x128xf32>
    %618 = arith.mulf %244, %617 : vector<2x128xf32>
    %619 = vector.broadcast %129 : f32 to vector<2x128xf32>
    %620 = arith.mulf %256, %619 : vector<2x128xf32>
    %621 = arith.addf %618, %620 : vector<2x128xf32>
    %622 = vector.broadcast %130 : f32 to vector<2x128xf32>
    %623 = arith.mulf %268, %622 : vector<2x128xf32>
    %624 = arith.addf %621, %623 : vector<2x128xf32>
    %625 = vector.broadcast %131 : f32 to vector<2x128xf32>
    %626 = arith.mulf %280, %625 : vector<2x128xf32>
    %627 = arith.addf %624, %626 : vector<2x128xf32>
    %628 = vector.broadcast %132 : f32 to vector<2x128xf32>
    %629 = arith.mulf %292, %628 : vector<2x128xf32>
    %630 = arith.addf %627, %629 : vector<2x128xf32>
    %631 = vector.broadcast %133 : f32 to vector<2x128xf32>
    %632 = arith.mulf %304, %631 : vector<2x128xf32>
    %633 = arith.addf %630, %632 : vector<2x128xf32>
    %634 = vector.broadcast %134 : f32 to vector<2x128xf32>
    %635 = arith.mulf %316, %634 : vector<2x128xf32>
    %636 = arith.addf %633, %635 : vector<2x128xf32>
    %637 = vector.broadcast %135 : f32 to vector<2x128xf32>
    %638 = arith.mulf %328, %637 : vector<2x128xf32>
    %639 = arith.addf %636, %638 : vector<2x128xf32>
    %640 = vector.broadcast %136 : f32 to vector<2x128xf32>
    %641 = arith.mulf %340, %640 : vector<2x128xf32>
    %642 = arith.addf %639, %641 : vector<2x128xf32>
    %643 = vector.broadcast %137 : f32 to vector<2x128xf32>
    %644 = arith.mulf %352, %643 : vector<2x128xf32>
    %645 = arith.addf %642, %644 : vector<2x128xf32>
    %646 = vector.broadcast %138 : f32 to vector<2x128xf32>
    %647 = arith.mulf %364, %646 : vector<2x128xf32>
    %648 = arith.addf %645, %647 : vector<2x128xf32>
    %649 = vector.broadcast %139 : f32 to vector<2x128xf32>
    %650 = arith.mulf %376, %649 : vector<2x128xf32>
    %651 = arith.addf %648, %650 : vector<2x128xf32>
    %652 = vector.broadcast %140 : f32 to vector<2x128xf32>
    %653 = arith.mulf %388, %652 : vector<2x128xf32>
    %654 = arith.addf %651, %653 : vector<2x128xf32>
    %655 = vector.broadcast %141 : f32 to vector<2x128xf32>
    %656 = arith.mulf %400, %655 : vector<2x128xf32>
    %657 = arith.addf %654, %656 : vector<2x128xf32>
    %658 = vector.broadcast %142 : f32 to vector<2x128xf32>
    %659 = arith.mulf %412, %658 : vector<2x128xf32>
    %660 = arith.addf %657, %659 : vector<2x128xf32>
    %661 = vector.broadcast %143 : f32 to vector<2x128xf32>
    %662 = arith.mulf %424, %661 : vector<2x128xf32>
    %663 = arith.addf %660, %662 : vector<2x128xf32>
    %664 = vector.broadcast %144 : f32 to vector<2x128xf32>
    %665 = arith.mulf %436, %664 : vector<2x128xf32>
    %666 = arith.addf %663, %665 : vector<2x128xf32>
    %667 = vector.broadcast %145 : f32 to vector<2x128xf32>
    %668 = arith.mulf %448, %667 : vector<2x128xf32>
    %669 = arith.addf %666, %668 : vector<2x128xf32>
    %670 = vector.broadcast %146 : f32 to vector<2x128xf32>
    %671 = arith.mulf %460, %670 : vector<2x128xf32>
    %672 = arith.addf %669, %671 : vector<2x128xf32>
    %673 = vector.broadcast %147 : f32 to vector<2x128xf32>
    %674 = arith.mulf %472, %673 : vector<2x128xf32>
    %675 = arith.addf %672, %674 : vector<2x128xf32>
    %676 = vector.broadcast %148 : f32 to vector<2x128xf32>
    %677 = arith.mulf %484, %676 : vector<2x128xf32>
    %678 = arith.addf %675, %677 : vector<2x128xf32>
    %679 = vector.broadcast %149 : f32 to vector<2x128xf32>
    %680 = arith.mulf %496, %679 : vector<2x128xf32>
    %681 = arith.addf %678, %680 : vector<2x128xf32>
    %682 = vector.broadcast %150 : f32 to vector<2x128xf32>
    %683 = arith.mulf %508, %682 : vector<2x128xf32>
    %684 = arith.addf %681, %683 : vector<2x128xf32>
    %685 = vector.broadcast %151 : f32 to vector<2x128xf32>
    %686 = arith.mulf %520, %685 : vector<2x128xf32>
    %687 = arith.addf %684, %686 : vector<2x128xf32>
    %688 = vector.broadcast %152 : f32 to vector<2x128xf32>
    %689 = arith.mulf %532, %688 : vector<2x128xf32>
    %690 = arith.addf %687, %689 : vector<2x128xf32>
    %691 = vector.broadcast %153 : f32 to vector<2x128xf32>
    %692 = arith.mulf %544, %691 : vector<2x128xf32>
    %693 = arith.addf %690, %692 : vector<2x128xf32>
    %694 = vector.broadcast %154 : f32 to vector<2x128xf32>
    %695 = arith.mulf %556, %694 : vector<2x128xf32>
    %696 = arith.addf %693, %695 : vector<2x128xf32>
    %697 = vector.broadcast %155 : f32 to vector<2x128xf32>
    %698 = arith.mulf %568, %697 : vector<2x128xf32>
    %699 = arith.addf %696, %698 : vector<2x128xf32>
    %700 = vector.broadcast %156 : f32 to vector<2x128xf32>
    %701 = arith.mulf %580, %700 : vector<2x128xf32>
    %702 = arith.addf %699, %701 : vector<2x128xf32>
    %703 = vector.broadcast %157 : f32 to vector<2x128xf32>
    %704 = arith.mulf %592, %703 : vector<2x128xf32>
    %705 = arith.addf %702, %704 : vector<2x128xf32>
    %706 = vector.broadcast %158 : f32 to vector<2x128xf32>
    %707 = arith.mulf %604, %706 : vector<2x128xf32>
    %708 = arith.addf %705, %707 : vector<2x128xf32>
    %709 = vector.broadcast %159 : f32 to vector<2x128xf32>
    %710 = arith.mulf %616, %709 : vector<2x128xf32>
    %711 = arith.addf %708, %710 : vector<2x128xf32>
    %712 = vector.broadcast %224 : f32 to vector<2x128xf32>
    %713 = arith.addf %711, %712 : vector<2x128xf32>
    %cst_40 = arith.constant 0.000000e+00 : f32
    %cst_41 = arith.constant 1.000000e+00 : f32
    %714 = vector.broadcast %cst_40 : f32 to vector<2x128xf32>
    %715 = arith.maximumf %714, %713 : vector<2x128xf32>
    %716 = vector.broadcast %cst_41 : f32 to vector<2x128xf32>
    %717 = arith.minimumf %716, %715 : vector<2x128xf32>
    %c0_42 = arith.constant 0 : index
    %c0_43 = arith.constant 0 : index
    %c0_44 = arith.constant 0 : index
    %718 = vector.load %arg3[%c0_42, %c0_43, %c0_44] : memref<3x2x128xf32, #tpu.memory_space<vmem>>, vector<1x2x128xf32>
    %719 = vector.shape_cast %718 : vector<1x2x128xf32> to vector<2x128xf32>
    %720 = vector.shape_cast %717 : vector<2x128xf32> to vector<1x2x128xf32>
    tpu.vector_store %arg3[%c0_42, %c0_43, %c0_44], %720 {strides = array<i32>} : memref<3x2x128xf32, #tpu.memory_space<vmem>>, vector<1x2x128xf32>,
    %721 = vector.broadcast %160 : f32 to vector<2x128xf32>
    %722 = arith.mulf %244, %721 : vector<2x128xf32>
    %723 = vector.broadcast %161 : f32 to vector<2x128xf32>
    %724 = arith.mulf %256, %723 : vector<2x128xf32>
    %725 = arith.addf %722, %724 : vector<2x128xf32>
    %726 = vector.broadcast %162 : f32 to vector<2x128xf32>
    %727 = arith.mulf %268, %726 : vector<2x128xf32>
    %728 = arith.addf %725, %727 : vector<2x128xf32>
    %729 = vector.broadcast %163 : f32 to vector<2x128xf32>
    %730 = arith.mulf %280, %729 : vector<2x128xf32>
    %731 = arith.addf %728, %730 : vector<2x128xf32>
    %732 = vector.broadcast %164 : f32 to vector<2x128xf32>
    %733 = arith.mulf %292, %732 : vector<2x128xf32>
    %734 = arith.addf %731, %733 : vector<2x128xf32>
    %735 = vector.broadcast %165 : f32 to vector<2x128xf32>
    %736 = arith.mulf %304, %735 : vector<2x128xf32>
    %737 = arith.addf %734, %736 : vector<2x128xf32>
    %738 = vector.broadcast %166 : f32 to vector<2x128xf32>
    %739 = arith.mulf %316, %738 : vector<2x128xf32>
    %740 = arith.addf %737, %739 : vector<2x128xf32>
    %741 = vector.broadcast %167 : f32 to vector<2x128xf32>
    %742 = arith.mulf %328, %741 : vector<2x128xf32>
    %743 = arith.addf %740, %742 : vector<2x128xf32>
    %744 = vector.broadcast %168 : f32 to vector<2x128xf32>
    %745 = arith.mulf %340, %744 : vector<2x128xf32>
    %746 = arith.addf %743, %745 : vector<2x128xf32>
    %747 = vector.broadcast %169 : f32 to vector<2x128xf32>
    %748 = arith.mulf %352, %747 : vector<2x128xf32>
    %749 = arith.addf %746, %748 : vector<2x128xf32>
    %750 = vector.broadcast %170 : f32 to vector<2x128xf32>
    %751 = arith.mulf %364, %750 : vector<2x128xf32>
    %752 = arith.addf %749, %751 : vector<2x128xf32>
    %753 = vector.broadcast %171 : f32 to vector<2x128xf32>
    %754 = arith.mulf %376, %753 : vector<2x128xf32>
    %755 = arith.addf %752, %754 : vector<2x128xf32>
    %756 = vector.broadcast %172 : f32 to vector<2x128xf32>
    %757 = arith.mulf %388, %756 : vector<2x128xf32>
    %758 = arith.addf %755, %757 : vector<2x128xf32>
    %759 = vector.broadcast %173 : f32 to vector<2x128xf32>
    %760 = arith.mulf %400, %759 : vector<2x128xf32>
    %761 = arith.addf %758, %760 : vector<2x128xf32>
    %762 = vector.broadcast %174 : f32 to vector<2x128xf32>
    %763 = arith.mulf %412, %762 : vector<2x128xf32>
    %764 = arith.addf %761, %763 : vector<2x128xf32>
    %765 = vector.broadcast %175 : f32 to vector<2x128xf32>
    %766 = arith.mulf %424, %765 : vector<2x128xf32>
    %767 = arith.addf %764, %766 : vector<2x128xf32>
    %768 = vector.broadcast %176 : f32 to vector<2x128xf32>
    %769 = arith.mulf %436, %768 : vector<2x128xf32>
    %770 = arith.addf %767, %769 : vector<2x128xf32>
    %771 = vector.broadcast %177 : f32 to vector<2x128xf32>
    %772 = arith.mulf %448, %771 : vector<2x128xf32>
    %773 = arith.addf %770, %772 : vector<2x128xf32>
    %774 = vector.broadcast %178 : f32 to vector<2x128xf32>
    %775 = arith.mulf %460, %774 : vector<2x128xf32>
    %776 = arith.addf %773, %775 : vector<2x128xf32>
    %777 = vector.broadcast %179 : f32 to vector<2x128xf32>
    %778 = arith.mulf %472, %777 : vector<2x128xf32>
    %779 = arith.addf %776, %778 : vector<2x128xf32>
    %780 = vector.broadcast %180 : f32 to vector<2x128xf32>
    %781 = arith.mulf %484, %780 : vector<2x128xf32>
    %782 = arith.addf %779, %781 : vector<2x128xf32>
    %783 = vector.broadcast %181 : f32 to vector<2x128xf32>
    %784 = arith.mulf %496, %783 : vector<2x128xf32>
    %785 = arith.addf %782, %784 : vector<2x128xf32>
    %786 = vector.broadcast %182 : f32 to vector<2x128xf32>
    %787 = arith.mulf %508, %786 : vector<2x128xf32>
    %788 = arith.addf %785, %787 : vector<2x128xf32>
    %789 = vector.broadcast %183 : f32 to vector<2x128xf32>
    %790 = arith.mulf %520, %789 : vector<2x128xf32>
    %791 = arith.addf %788, %790 : vector<2x128xf32>
    %792 = vector.broadcast %184 : f32 to vector<2x128xf32>
    %793 = arith.mulf %532, %792 : vector<2x128xf32>
    %794 = arith.addf %791, %793 : vector<2x128xf32>
    %795 = vector.broadcast %185 : f32 to vector<2x128xf32>
    %796 = arith.mulf %544, %795 : vector<2x128xf32>
    %797 = arith.addf %794, %796 : vector<2x128xf32>
    %798 = vector.broadcast %186 : f32 to vector<2x128xf32>
    %799 = arith.mulf %556, %798 : vector<2x128xf32>
    %800 = arith.addf %797, %799 : vector<2x128xf32>
    %801 = vector.broadcast %187 : f32 to vector<2x128xf32>
    %802 = arith.mulf %568, %801 : vector<2x128xf32>
    %803 = arith.addf %800, %802 : vector<2x128xf32>
    %804 = vector.broadcast %188 : f32 to vector<2x128xf32>
    %805 = arith.mulf %580, %804 : vector<2x128xf32>
    %806 = arith.addf %803, %805 : vector<2x128xf32>
    %807 = vector.broadcast %189 : f32 to vector<2x128xf32>
    %808 = arith.mulf %592, %807 : vector<2x128xf32>
    %809 = arith.addf %806, %808 : vector<2x128xf32>
    %810 = vector.broadcast %190 : f32 to vector<2x128xf32>
    %811 = arith.mulf %604, %810 : vector<2x128xf32>
    %812 = arith.addf %809, %811 : vector<2x128xf32>
    %813 = vector.broadcast %191 : f32 to vector<2x128xf32>
    %814 = arith.mulf %616, %813 : vector<2x128xf32>
    %815 = arith.addf %812, %814 : vector<2x128xf32>
    %816 = vector.broadcast %225 : f32 to vector<2x128xf32>
    %817 = arith.addf %815, %816 : vector<2x128xf32>
    %cst_45 = arith.constant 0.000000e+00 : f32
    %cst_46 = arith.constant 1.000000e+00 : f32
    %818 = vector.broadcast %cst_45 : f32 to vector<2x128xf32>
    %819 = arith.maximumf %818, %817 : vector<2x128xf32>
    %820 = vector.broadcast %cst_46 : f32 to vector<2x128xf32>
    %821 = arith.minimumf %820, %819 : vector<2x128xf32>
    %c1_47 = arith.constant 1 : index
    %c0_48 = arith.constant 0 : index
    %c0_49 = arith.constant 0 : index
    %822 = vector.load %arg3[%c1_47, %c0_48, %c0_49] : memref<3x2x128xf32, #tpu.memory_space<vmem>>, vector<1x2x128xf32>
    %823 = vector.shape_cast %822 : vector<1x2x128xf32> to vector<2x128xf32>
    %824 = vector.shape_cast %821 : vector<2x128xf32> to vector<1x2x128xf32>
    tpu.vector_store %arg3[%c1_47, %c0_48, %c0_49], %824 {strides = array<i32>} : memref<3x2x128xf32, #tpu.memory_space<vmem>>, vector<1x2x128xf32>,
    %825 = vector.broadcast %192 : f32 to vector<2x128xf32>
    %826 = arith.mulf %244, %825 : vector<2x128xf32>
    %827 = vector.broadcast %193 : f32 to vector<2x128xf32>
    %828 = arith.mulf %256, %827 : vector<2x128xf32>
    %829 = arith.addf %826, %828 : vector<2x128xf32>
    %830 = vector.broadcast %194 : f32 to vector<2x128xf32>
    %831 = arith.mulf %268, %830 : vector<2x128xf32>
    %832 = arith.addf %829, %831 : vector<2x128xf32>
    %833 = vector.broadcast %195 : f32 to vector<2x128xf32>
    %834 = arith.mulf %280, %833 : vector<2x128xf32>
    %835 = arith.addf %832, %834 : vector<2x128xf32>
    %836 = vector.broadcast %196 : f32 to vector<2x128xf32>
    %837 = arith.mulf %292, %836 : vector<2x128xf32>
    %838 = arith.addf %835, %837 : vector<2x128xf32>
    %839 = vector.broadcast %197 : f32 to vector<2x128xf32>
    %840 = arith.mulf %304, %839 : vector<2x128xf32>
    %841 = arith.addf %838, %840 : vector<2x128xf32>
    %842 = vector.broadcast %198 : f32 to vector<2x128xf32>
    %843 = arith.mulf %316, %842 : vector<2x128xf32>
    %844 = arith.addf %841, %843 : vector<2x128xf32>
    %845 = vector.broadcast %199 : f32 to vector<2x128xf32>
    %846 = arith.mulf %328, %845 : vector<2x128xf32>
    %847 = arith.addf %844, %846 : vector<2x128xf32>
    %848 = vector.broadcast %200 : f32 to vector<2x128xf32>
    %849 = arith.mulf %340, %848 : vector<2x128xf32>
    %850 = arith.addf %847, %849 : vector<2x128xf32>
    %851 = vector.broadcast %201 : f32 to vector<2x128xf32>
    %852 = arith.mulf %352, %851 : vector<2x128xf32>
    %853 = arith.addf %850, %852 : vector<2x128xf32>
    %854 = vector.broadcast %202 : f32 to vector<2x128xf32>
    %855 = arith.mulf %364, %854 : vector<2x128xf32>
    %856 = arith.addf %853, %855 : vector<2x128xf32>
    %857 = vector.broadcast %203 : f32 to vector<2x128xf32>
    %858 = arith.mulf %376, %857 : vector<2x128xf32>
    %859 = arith.addf %856, %858 : vector<2x128xf32>
    %860 = vector.broadcast %204 : f32 to vector<2x128xf32>
    %861 = arith.mulf %388, %860 : vector<2x128xf32>
    %862 = arith.addf %859, %861 : vector<2x128xf32>
    %863 = vector.broadcast %205 : f32 to vector<2x128xf32>
    %864 = arith.mulf %400, %863 : vector<2x128xf32>
    %865 = arith.addf %862, %864 : vector<2x128xf32>
    %866 = vector.broadcast %206 : f32 to vector<2x128xf32>
    %867 = arith.mulf %412, %866 : vector<2x128xf32>
    %868 = arith.addf %865, %867 : vector<2x128xf32>
    %869 = vector.broadcast %207 : f32 to vector<2x128xf32>
    %870 = arith.mulf %424, %869 : vector<2x128xf32>
    %871 = arith.addf %868, %870 : vector<2x128xf32>
    %872 = vector.broadcast %208 : f32 to vector<2x128xf32>
    %873 = arith.mulf %436, %872 : vector<2x128xf32>
    %874 = arith.addf %871, %873 : vector<2x128xf32>
    %875 = vector.broadcast %209 : f32 to vector<2x128xf32>
    %876 = arith.mulf %448, %875 : vector<2x128xf32>
    %877 = arith.addf %874, %876 : vector<2x128xf32>
    %878 = vector.broadcast %210 : f32 to vector<2x128xf32>
    %879 = arith.mulf %460, %878 : vector<2x128xf32>
    %880 = arith.addf %877, %879 : vector<2x128xf32>
    %881 = vector.broadcast %211 : f32 to vector<2x128xf32>
    %882 = arith.mulf %472, %881 : vector<2x128xf32>
    %883 = arith.addf %880, %882 : vector<2x128xf32>
    %884 = vector.broadcast %212 : f32 to vector<2x128xf32>
    %885 = arith.mulf %484, %884 : vector<2x128xf32>
    %886 = arith.addf %883, %885 : vector<2x128xf32>
    %887 = vector.broadcast %213 : f32 to vector<2x128xf32>
    %888 = arith.mulf %496, %887 : vector<2x128xf32>
    %889 = arith.addf %886, %888 : vector<2x128xf32>
    %890 = vector.broadcast %214 : f32 to vector<2x128xf32>
    %891 = arith.mulf %508, %890 : vector<2x128xf32>
    %892 = arith.addf %889, %891 : vector<2x128xf32>
    %893 = vector.broadcast %215 : f32 to vector<2x128xf32>
    %894 = arith.mulf %520, %893 : vector<2x128xf32>
    %895 = arith.addf %892, %894 : vector<2x128xf32>
    %896 = vector.broadcast %216 : f32 to vector<2x128xf32>
    %897 = arith.mulf %532, %896 : vector<2x128xf32>
    %898 = arith.addf %895, %897 : vector<2x128xf32>
    %899 = vector.broadcast %217 : f32 to vector<2x128xf32>
    %900 = arith.mulf %544, %899 : vector<2x128xf32>
    %901 = arith.addf %898, %900 : vector<2x128xf32>
    %902 = vector.broadcast %218 : f32 to vector<2x128xf32>
    %903 = arith.mulf %556, %902 : vector<2x128xf32>
    %904 = arith.addf %901, %903 : vector<2x128xf32>
    %905 = vector.broadcast %219 : f32 to vector<2x128xf32>
    %906 = arith.mulf %568, %905 : vector<2x128xf32>
    %907 = arith.addf %904, %906 : vector<2x128xf32>
    %908 = vector.broadcast %220 : f32 to vector<2x128xf32>
    %909 = arith.mulf %580, %908 : vector<2x128xf32>
    %910 = arith.addf %907, %909 : vector<2x128xf32>
    %911 = vector.broadcast %221 : f32 to vector<2x128xf32>
    %912 = arith.mulf %592, %911 : vector<2x128xf32>
    %913 = arith.addf %910, %912 : vector<2x128xf32>
    %914 = vector.broadcast %222 : f32 to vector<2x128xf32>
    %915 = arith.mulf %604, %914 : vector<2x128xf32>
    %916 = arith.addf %913, %915 : vector<2x128xf32>
    %917 = vector.broadcast %223 : f32 to vector<2x128xf32>
    %918 = arith.mulf %616, %917 : vector<2x128xf32>
    %919 = arith.addf %916, %918 : vector<2x128xf32>
    %920 = vector.broadcast %226 : f32 to vector<2x128xf32>
    %921 = arith.addf %919, %920 : vector<2x128xf32>
    %cst_50 = arith.constant 0.000000e+00 : f32
    %cst_51 = arith.constant 1.000000e+00 : f32
    %922 = vector.broadcast %cst_50 : f32 to vector<2x128xf32>
    %923 = arith.maximumf %922, %921 : vector<2x128xf32>
    %924 = vector.broadcast %cst_51 : f32 to vector<2x128xf32>
    %925 = arith.minimumf %924, %923 : vector<2x128xf32>
    %c2_52 = arith.constant 2 : index
    %c0_53 = arith.constant 0 : index
    %c0_54 = arith.constant 0 : index
    %926 = vector.load %arg3[%c2_52, %c0_53, %c0_54] : memref<3x2x128xf32, #tpu.memory_space<vmem>>, vector<1x2x128xf32>
    %927 = vector.shape_cast %926 : vector<1x2x128xf32> to vector<2x128xf32>
    %928 = vector.shape_cast %925 : vector<2x128xf32> to vector<1x2x128xf32>
    tpu.vector_store %arg3[%c2_52, %c0_53, %c0_54], %928 {strides = array<i32>} : memref<3x2x128xf32, #tpu.memory_space<vmem>>, vector<1x2x128xf32>,
    return
  }
  func.func @transform_0(%arg0: i32) -> i32 {
    %c0_i32 = arith.constant 0 : i32
    %c0_i32_0 = arith.constant 0 : i32
    return %c0_i32 : i32
  }
  func.func @transform_1(%arg0: i32) -> (i32, i32, i32) {
    %c0_i32 = arith.constant 0 : i32
    %c0_i32_0 = arith.constant 0 : i32
    %c0_i32_1 = arith.constant 0 : i32
    return %c0_i32, %arg0, %c0_i32_0 : i32, i32, i32
  }
  func.func @transform_2(%arg0: i32) -> (i32, i32, i32) {
    %c0_i32 = arith.constant 0 : i32
    %c0_i32_0 = arith.constant 0 : i32
    %c0_i32_1 = arith.constant 0 : i32
    return %c0_i32, %arg0, %c0_i32_0 : i32, i32, i32
  }
}

</mosaic_0001>

<bundles_post_ra>
// kernel: tpu_custom_call.1
= control target key start
LH: loop header
LB: loop body
LE: loop exit
PB: predicated region body
PF: predicated region fallthrough
CT: control target
= control target key end

     0   :  { %s2222_s0 = inlined_call_operand.hbm [shape: f32[227], index: 0, kind: input, shape index: {}]   ;;  %s2223_s1 = inlined_call_operand.hbm [shape: f32[3,2,128], index: 1, kind: input, shape index: {}]   ;;  %s2224_s2 = inlined_call_operand.hbm [shape: f32[3,2,128], index: 2, kind: output, shape index: {}]  }
   0x1   :  { %2228 = sst [smem:[#allocation51_spill]] %s2224_s2 }
   0x2   :  { %7 = vsyncpa [#allocation5], 0 }
   0x3   :  { %8 = vsyncpa [#allocation3], 0 }
   0x4   :  { %9 = vsyncpa [#allocation4], 0  ;;  %s15_s11 = sshll.u32 %s2222_s0, 4  ;;  %s23_s14 = sshll.u32 %s2223_s1, 4  ;;  %s16_s11 = int_to_ptr.hbm [resolvable:$true] %s15_s11  ;;  %s24_s14 = int_to_ptr.hbm [resolvable:$true] %s23_s14 }
   0x5   :  { %s1244_s15 = smov [#allocation2]   ;;  %s1245_s16 = smov [#allocation6]  }
   0x6   :  { %18 = dma.hbm_to_smem %s16_s11, 32, %s1244_s15, [#allocation5]  }
   0x7   :  { %s25_s17 = sshll.u32 %s1245_s16, 4  ;;  %s2225_s18 = smov 32   ;;  %s26_s17 = int_to_ptr.vmem [resolvable:$true] %s25_s17 }
   0x8   :  { %s2226_s19 = smov 2  }
   0x9   :  { %31 = dma.hbm_to_vmem [thread:$0]  %s24_s14, 96, %s26_s17, [#allocation3], %s2225_s18, %s2225_s18, %s2226_s19  }
   0xa   :  { %1238 = dma.done.wait [#allocation5], 32  }
   0xb   :  { %1239 = vsyncadd [#allocation5], 4294967264 }
   0xc   :  { %1240 = dma.done.wait [#allocation3], 96  }
   0xd   :  { %1241 = vsyncadd [#allocation3], 4294967200 }
   0xe   :  { %40 = sfence }
   0xf   :  { %s1273_s0 = sld [smem:[#allocation2]]  ;;  %v1403_v0 = vld [vmem:[#allocation6] sm:$0x3]  ;;  %v1405_v1 = vld [vmem:[#allocation6 + $0x2] sm:$0x3] }
  0x10   :  { %s1275_s1 = sld [smem:[#allocation2 + $0x20]]  ;;  %v1421_v8 = vld [vmem:[#allocation6 + $0x4] sm:$0x3] }
  0x11   :  { %s1277_s20 = sld [smem:[#allocation2 + $0x40]] }
  0x12   :  { %s1279_s21 = sld [smem:[#allocation2 + $0x1]] }
  0x13   :  { %s1281_s22 = sld [smem:[#allocation2 + $0x21]] }
  0x14   :  { %s1283_s23 = sld [smem:[#allocation2 + $0x41]] }
  0x15   :  { %s1285_s24 = sld [smem:[#allocation2 + $0x2]]  ;;  %v273_v2 = vstv %s1273_s0 }
  0x16   :  { %s1287_s25 = sld [smem:[#allocation2 + $0x22]]  ;;  %v275_v3 = vstv %s1275_s1  ;;  %v274_v6 = vmul.f32 %v273_v2, %v1403_v0 }
  0x17   :  { %s1289_s26 = sld [smem:[#allocation2 + $0x42]]  ;;  %v276_v7 = vmul.f32 %v275_v3, %v1405_v1  ;;  %v278_v9 = vstv %s1277_s20 }
  0x18   :  { %s1291_s27 = sld [smem:[#allocation2 + $0x3]]  ;;  %v284_v4 = vstv %s1279_s21  ;;  %v279_v14 = vmul.f32 %v278_v9, %v1421_v8 }
  0x19   :  { %s1293_s28 = sld [smem:[#allocation2 + $0x23]]  ;;  %v286_v5 = vstv %s1281_s22  ;;  %v285_v10 = vmul.f32 %v284_v4, %v1403_v0  ;;  %v277_v13 = vadd.f32 %v276_v7, %v274_v6 }
  0x1a   :  { %s1295_s29 = sld [smem:[#allocation2 + $0x43]]  ;;  %v287_v11 = vmul.f32 %v286_v5, %v1405_v1  ;;  %v289_v12 = vstv %s1283_s23 }
  0x1b   :  { %s1297_s30 = sld [smem:[#allocation2 + $0x4]]  ;;  %v295_v15 = vstv %s1285_s24  ;;  %v290_v22 = vmul.f32 %v289_v12, %v1421_v8  ;;  %v280_v30 = vadd.f32 %v279_v14, %v277_v13 }
  0x1c   :  { %s1299_s3 = sld [smem:[#allocation2 + $0x24]]  ;;  %v297_v16 = vstv %s1287_s25  ;;  %v288_v21 = vadd.f32 %v287_v11, %v285_v10  ;;  %v296_v23 = vmul.f32 %v295_v15, %v1403_v0 }
  0x1d   :  { %s1301_s4 = sld [smem:[#allocation2 + $0x44]]  ;;  %v298_v24 = vmul.f32 %v297_v16, %v1405_v1  ;;  %v300_v25 = vstv %s1289_s26 }
  0x1e   :  { %s1303_s5 = sld [smem:[#allocation2 + $0x5]]  ;;  %v306_v17 = vstv %s1291_s27  ;;  %v291_v38 = vadd.f32 %v290_v22, %v288_v21  ;;  %v301_v40 = vmul.f32 %v300_v25, %v1421_v8 }
  0x1f   :  { %s1305_s6 = sld [smem:[#allocation2 + $0x25]]  ;;  %v308_v18 = vstv %s1293_s28  ;;  %v307_v26 = vmul.f32 %v306_v17, %v1403_v0  ;;  %v299_v39 = vadd.f32 %v298_v24, %v296_v23 }
  0x20   :  { %s1307_s7 = sld [smem:[#allocation2 + $0x45]]  ;;  %v309_v27 = vmul.f32 %v308_v18, %v1405_v1  ;;  %v311_v31 = vstv %s1295_s29 }
  0x21   :  { %s1309_s8 = sld [smem:[#allocation2 + $0x6]]  ;;  %v317_v19 = vstv %s1297_s30  ;;  %v312_v42 = vmul.f32 %v311_v31, %v1421_v8  ;;  %v302_v53 = vadd.f32 %v301_v40, %v299_v39 }
  0x22   :  { %s1311_s9 = sld [smem:[#allocation2 + $0x26]]  ;;  %v319_v20 = vstv %s1299_s3  ;;  %v318_v28 = vmul.f32 %v317_v19, %v1403_v0  ;;  %v310_v41 = vadd.f32 %v309_v27, %v307_v26 }
  0x23   :  { %s1313_s10 = sld [smem:[#allocation2 + $0x46]]  ;;  %v320_v29 = vmul.f32 %v319_v20, %v1405_v1  ;;  %v322_v32 = vstv %s1301_s4 }
  0x24   :  { %s1315_s11 = sld [smem:[#allocation2 + $0x7]]  ;;  %v328_v33 = vstv %s1303_s5  ;;  %v323_v44 = vmul.f32 %v322_v32, %v1421_v8  ;;  %v313_v57 = vadd.f32 %v312_v42, %v310_v41 }
  0x25   :  { %s1317_s12 = sld [smem:[#allocation2 + $0x27]]  ;;  %v330_v34 = vstv %s1305_s6  ;;  %v321_v43 = vadd.f32 %v320_v29, %v318_v28  ;;  %v329_v45 = vmul.f32 %v328_v33, %v1403_v0 }
  0x26   :  { %s1319_s13 = sld [smem:[#allocation2 + $0x47]]  ;;  %v331_v46 = vmul.f32 %v330_v34, %v1405_v1  ;;  %v333_v51 = vstv %s1307_s7 }
  0x27   :  { %s1321_s14 = sld [smem:[#allocation2 + $0x8]]  ;;  %v339_v35 = vstv %s1309_s8  ;;  %v324_v59 = vadd.f32 %v323_v44, %v321_v43  ;;  %v334_v62 = vmul.f32 %v333_v51, %v1421_v8 }
  0x28   :  { %s1323_s15 = sld [smem:[#allocation2 + $0x28]]  ;;  %v341_v36 = vstv %s1311_s9  ;;  %v340_v47 = vmul.f32 %v339_v35, %v1403_v0  ;;  %v332_v61 = vadd.f32 %v331_v46, %v329_v45 }
  0x29   :  { %2229 = sst [smem:[#allocation11_spill]] %s1313_s10  ;;  %v342_v48 = vmul.f32 %v341_v36, %v1405_v1 }
  0x2a   :  { %2230 = sst [smem:[#allocation12_spill]] %s1315_s11  ;;  %v335_v14 = vadd.f32 %v334_v62, %v332_v61 }
  0x2b   :  { %2231 = sst [smem:[#allocation13_spill]] %s1317_s12  ;;  %v343_v63 = vadd.f32 %v342_v48, %v340_v47 }
  0x2c   :  { %2232 = sst [smem:[#allocation14_spill]] %s1319_s13 }
  0x2d   :  { %2233 = sst [smem:[#allocation15_spill]] %s1321_s14 }
  0x2e   :  { %2234 = sst [smem:[#allocation16_spill]] %s1323_s15 }
  0x2f   :  { %s1325_s16 = sld [smem:[#allocation2 + $0x48]] }
  0x30   :  { %s1327_s17 = sld [smem:[#allocation2 + $0x9]] }
  0x31   :  { %s1329_s18 = sld [smem:[#allocation2 + $0x29]] }
  0x32   :  { %s1331_s19 = sld [smem:[#allocation2 + $0x49]] }
  0x33   :  { %s1333_s2 = sld [smem:[#allocation2 + $0xa]] }
  0x34   :  { %s1335_s10 = sld [smem:[#allocation2 + $0x2a]] }
  0x35   :  { %2235 = sst [smem:[#allocation17_spill]] %s1325_s16 }
  0x36   :  { %2236 = sst [smem:[#allocation18_spill]] %s1327_s17 }
  0x37   :  { %2237 = sst [smem:[#allocation19_spill]] %s1329_s18 }
  0x38   :  { %2238 = sst [smem:[#allocation20_spill]] %s1331_s19 }
  0x39   :  { %2239 = sst [smem:[#allocation21_spill]] %s1333_s2 }
  0x3a   :  { %2240 = sst [smem:[#allocation22_spill]] %s1335_s10 }
  0x3b   :  { %s1337_s11 = sld [smem:[#allocation2 + $0x4a]] }
  0x3c   :  { %s1339_s12 = sld [smem:[#allocation2 + $0xb]] }
  0x3d   :  { %s1341_s13 = sld [smem:[#allocation2 + $0x2b]] }
  0x3e   :  { %s1343_s14 = sld [smem:[#allocation2 + $0x4b]] }
  0x3f   :  { %s1345_s15 = sld [smem:[#allocation2 + $0xc]] }
  0x40   :  { %s1347_s16 = sld [smem:[#allocation2 + $0x2c]] }
  0x41   :  { %2241 = sst [smem:[#allocation23_spill]] %s1337_s11 }
  0x42   :  { %2242 = sst [smem:[#allocation24_spill]] %s1339_s12 }
  0x43   :  { %2243 = sst [smem:[#allocation25_spill]] %s1341_s13 }
  0x44   :  { %2244 = sst [smem:[#allocation26_spill]] %s1343_s14 }
  0x45   :  { %2245 = sst [smem:[#allocation27_spill]] %s1345_s15 }
  0x46   :  { %2246 = sst [smem:[#allocation28_spill]] %s1347_s16 }
  0x47   :  { %s1349_s17 = sld [smem:[#allocation2 + $0x4c]] }
  0x48   :  { %s1351_s18 = sld [smem:[#allocation2 + $0xd]] }
  0x49   :  { %s1353_s19 = sld [smem:[#allocation2 + $0x2d]] }
  0x4a   :  { %s1355_s2 = sld [smem:[#allocation2 + $0x4d]] }
  0x4b   :  { %s1357_s10 = sld [smem:[#allocation2 + $0xe]] }
  0x4c   :  { %s1359_s11 = sld [smem:[#allocation2 + $0x2e]] }
  0x4d   :  { %2247 = sst [smem:[#allocation29_spill]] %s1349_s17 }
  0x4e   :  { %2248 = sst [smem:[#allocation30_spill]] %s1351_s18 }
  0x4f   :  { %2249 = sst [smem:[#allocation31_spill]] %s1353_s19 }
  0x50   :  { %2250 = sst [smem:[#allocation32_spill]] %s1355_s2 }
  0x51   :  { %s1361_s12 = sld [smem:[#allocation2 + $0x4e]] }
  0x52   :  { %2251 = sst [smem:[#allocation33_spill]] %s1359_s11 }
  0x53   :  { %s1363_s13 = sld [smem:[#allocation2 + $0xf]] }
  0x54   :  { %s1365_s14 = sld [smem:[#allocation2 + $0x2f]] }
  0x55   :  { %s1367_s15 = sld [smem:[#allocation2 + $0x4f]] }
  0x56   :  { %s1369_s16 = sld [smem:[#allocation2 + $0x10]] }
  0x57   :  { %2252 = sst [smem:[#allocation34_spill]] %s1361_s12 }
  0x58   :  { %s1371_s17 = sld [smem:[#allocation2 + $0x30]] }
  0x59   :  { %2253 = sst [smem:[#allocation35_spill]] %s1363_s13 }
  0x5a   :  { %2254 = sst [smem:[#allocation36_spill]] %s1365_s14 }
  0x5b   :  { %2255 = sst [smem:[#allocation37_spill]] %s1367_s15 }
  0x5c   :  { %2256 = sst [smem:[#allocation38_spill]] %s1369_s16 }
  0x5d   :  { %s1373_s18 = sld [smem:[#allocation2 + $0x50]] }
  0x5e   :  { %2257 = sst [smem:[#allocation39_spill]] %s1371_s17 }
  0x5f   :  { %s1375_s19 = sld [smem:[#allocation2 + $0x11]] }
  0x60   :  { %s1377_s2 = sld [smem:[#allocation2 + $0x31]] }
  0x61   :  { %s1379_s11 = sld [smem:[#allocation2 + $0x51]] }
  0x62   :  { %s1381_s12 = sld [smem:[#allocation2 + $0x12]] }
  0x63   :  { %2258 = sst [smem:[#allocation40_spill]] %s1373_s18 }
  0x64   :  { %s1383_s13 = sld [smem:[#allocation2 + $0x32]] }
  0x65   :  { %2259 = sst [smem:[#allocation41_spill]] %s1375_s19 }
  0x66   :  { %2260 = sst [smem:[#allocation42_spill]] %s1377_s2 }
  0x67   :  { %s1385_s15 = sld [smem:[#allocation2 + $0x52]] }
  0x68   :  { %2261 = sst [smem:[#allocation43_spill]] %s1381_s12 }
  0x69   :  { %s1387_s16 = sld [smem:[#allocation2 + $0x13]] }
  0x6a   :  { %2262 = sst [smem:[#allocation44_spill]] %s1383_s13 }
  0x6b   :  { %s1389_s17 = sld [smem:[#allocation2 + $0x33]] }
  0x6c   :  { %s1391_s18 = sld [smem:[#allocation2 + $0x53]] }
  0x6d   :  { %2263 = sst [smem:[#allocation45_spill]] %s1385_s15 }
  0x6e   :  { %s1393_s19 = sld [smem:[#allocation2 + $0x14]] }
  0x6f   :  { %s1395_s2 = sld [smem:[#allocation2 + $0x34]] }
  0x70   :  { %s1397_s14 = sld [smem:[#allocation2 + $0x54]] }
  0x71   :  { %s1399_s12 = sld [smem:[#allocation2 + $0x15]] }
  0x72   :  { %2264 = sst [smem:[#allocation46_spill]] %s1391_s18 }
  0x73   :  { %s1401_s13 = sld [smem:[#allocation2 + $0x35]] }
  0x74   :  { %s1409_s15 = sld [smem:[#allocation2 + $0x55]] }
  0x75   :  { %s1411_s18 = sld [smem:[#allocation2 + $0x16]] }
  0x76   :  { %2265 = sst [smem:[#allocation47_spill]] %s1397_s14 }
  0x77   :  { %s1415_s14 = sld [smem:[#allocation2 + $0x36]] }
  0x78   :  { %s1424_s0 = sld [smem:[#allocation2 + $0x17]] }
  0x79   :  { %2266 = sst [smem:[#allocation48_spill]] %s1401_s13 }
  0x7a   :  { %s1419_s13 = sld [smem:[#allocation2 + $0x56]] }
  0x7b   :  { %s1428_s1 = sld [smem:[#allocation2 + $0x60]] }
  0x7c   :  { %s1431_s21 = sld [smem:[#allocation2 + $0x37]] }
  0x7d   :  { %s1436_s22 = sld [smem:[#allocation2 + $0x61]] }
  0x7e   :  { %s1442_s20 = sld [smem:[#allocation2 + $0x62]] }
  0x7f   :  { %s1444_s23 = sld [smem:[#allocation2 + $0x63]] }
  0x80   :  { %2267 = sst [smem:[#allocation49_spill]] %s1419_s13 }
  0x81   :  { %s1450_s24 = sld [smem:[#allocation2 + $0x64]]  ;;  %v281_v37 = vstv %s1428_s1 }
  0x82   :  { %s1456_s25 = sld [smem:[#allocation2 + $0x57]]  ;;  %v282_v49 = vadd.f32 %v281_v37, %v280_v30 }
  0x83   :  { %s1460_s27 = sld [smem:[#allocation2 + $0x18]]  ;;  %v292_v50 = vstv %s1436_s22 }
  0x84   :  { %s1466_s26 = sld [smem:[#allocation2 + $0x38]]  ;;  %v303_v54 = vstv %s1442_s20  ;;  %v293_v5 = vadd.f32 %v292_v50, %v291_v38  ;;  %v1511_v13 = vmax.f32 %v282_v49, 0.0 }
  0x85   :  { %s2269_s28 = sld [smem:[#allocation11_spill]]  ;;  %v314_v58 = vstv %s1444_s23  ;;  %v304_v6 = vadd.f32 %v303_v54, %v302_v53 }
  0x86   :  { %s1470_s30 = sld [smem:[#allocation2 + $0x58]]  ;;  %v315_v9 = vadd.f32 %v314_v58, %v313_v57  ;;  %v1521_v21 = vmax.f32 %v293_v5, 0.0 }
  0x87   :  { %s2271_s29 = sld [smem:[#allocation12_spill]]  ;;  %v325_v60 = vstv %s1450_s24  ;;  %v1523_v22 = vmax.f32 %v304_v6, 0.0 }
  0x88   :  { %2268 = sst [smem:[#allocation50_spill]] %s1456_s25  ;;  %v326_v10 = vadd.f32 %v325_v60, %v324_v59  ;;  %v1529_v25 = vmax.f32 %v315_v9, 0.0 }
  0x89   :  { %s2272_s3 = sld [smem:[#allocation13_spill]] }
  0x8a   :  { %s1474_s4 = sld [smem:[#allocation2 + $0x65]]  ;;  %v1531_v26 = vmax.f32 %v326_v10, 0.0 }
  0x8b   :  { %s1480_s5 = sld [smem:[#allocation2 + $0x66]]  ;;  %v344_v52 = vstv %s2269_s28 }
  0x8c   :  { %2270 = sst [smem:[#allocation11_spill]] %s1470_s30  ;;  %v345_v2 = vmul.f32 %v344_v52, %v1421_v8 }
  0x8d   :  { %s1485_s6 = sld [smem:[#allocation2 + $0x19]]  ;;  %v350_v55 = vstv %s2271_s29 }
  0x8e   :  { %s1490_s8 = sld [smem:[#allocation2 + $0x67]]  ;;  %v351_v3 = vmul.f32 %v350_v55, %v1403_v0  ;;  %v346_v16 = vadd.f32 %v345_v2, %v343_v63  ;;  %v427_v55 = vstv %s1357_s10 }
  0x8f   :  { %v352_v56 = vstv %s2272_s3  ;;  %s2274_s9 = sld [smem:[#allocation14_spill]]  ;;  %v428_v5 = vmul.f32 %v427_v55, %v1403_v0 }
  0x90   :  { %s2275_s1 = sld [smem:[#allocation15_spill]]  ;;  %v353_v4 = vmul.f32 %v352_v56, %v1405_v1  ;;  %v336_v15 = vstv %s1474_s4 }
  0x91   :  { %s1494_s30 = sld [smem:[#allocation2 + $0x39]]  ;;  %v347_v17 = vstv %s1480_s5  ;;  %v1537_v29 = vadd.f32 %v336_v15, %v335_v14 }
  0x92   :  { %s2277_s25 = sld [smem:[#allocation16_spill]]  ;;  %v354_v18 = vadd.f32 %v353_v4, %v351_v3  ;;  %v1539_v30 = vadd.f32 %v347_v17, %v346_v16 }
  0x93   :  { %2273 = sst [smem:[#allocation12_spill]] %s1485_s6 }
  0x94   :  { %s1498_s7 = sld [smem:[#allocation2 + $0x68]]  ;;  %v358_v27 = vstv %s1490_s8 }
  0x95   :  { %s1502_s22 = sld [smem:[#allocation2 + $0x59]]  ;;  %v355_v7 = vstv %s2274_s9 }
  0x96   :  { %s2279_s20 = sld [smem:[#allocation17_spill]]  ;;  %v361_v11 = vstv %s2275_s1  ;;  %v356_v19 = vmul.f32 %v355_v7, %v1421_v8 }
  0x97   :  { %2276 = sst [smem:[#allocation13_spill]] %s1494_s30  ;;  %v362_v23 = vmul.f32 %v361_v11, %v1403_v0 }
  0x98   :  { %s1505_s23 = sld [smem:[#allocation2 + $0x1a]]  ;;  %v363_v12 = vstv %s2277_s25  ;;  %v357_v33 = vadd.f32 %v356_v19, %v354_v18 }
  0x99   :  { %s1509_s24 = sld [smem:[#allocation2 + $0x3a]]  ;;  %v364_v24 = vmul.f32 %v363_v12, %v1405_v1 }
  0x9a   :  { %s2282_s28 = sld [smem:[#allocation18_spill]]  ;;  %v369_v34 = vstv %s1498_s7  ;;  %v359_v17 = vadd.f32 %v358_v27, %v357_v33 }
  0x9b   :  { %2278 = sst [smem:[#allocation14_spill]] %s1502_s22  ;;  %v365_v37 = vadd.f32 %v364_v24, %v362_v23 }
  0x9c   :  { %s1514_s29 = sld [smem:[#allocation2 + $0x5a]]  ;;  %v366_v20 = vstv %s2279_s20 }
  0x9d   :  { %s2284_s3 = sld [smem:[#allocation19_spill]]  ;;  %v367_v31 = vmul.f32 %v366_v20, %v1421_v8 }
  0x9e   :  { %2280 = sst [smem:[#allocation15_spill]] %s1505_s23 }
  0x9f   :  { %2281 = sst [smem:[#allocation16_spill]] %s1509_s24  ;;  %v368_v7 = vadd.f32 %v367_v31, %v365_v37 }
  0xa0   :  { %s1519_s9 = sld [smem:[#allocation2 + $0x1b]]  ;;  %v372_v28 = vstv %s2282_s28 }
  0xa1   :  { %s2286_s25 = sld [smem:[#allocation21_spill]]  ;;  %v373_v38 = vmul.f32 %v372_v28, %v1403_v0 }
  0xa2   :  { %2283 = sst [smem:[#allocation17_spill]] %s1514_s29 }
  0xa3   :  { %s2287_s4 = sld [smem:[#allocation22_spill]]  ;;  %v374_v32 = vstv %s2284_s3 }
  0xa4   :  { %s1527_s1 = sld [smem:[#allocation2 + $0x3b]]  ;;  %v375_v41 = vmul.f32 %v374_v32, %v1405_v1 }
  0xa5   :  { %s2289_s5 = sld [smem:[#allocation24_spill]] }
  0xa6   :  { %2285 = sst [smem:[#allocation18_spill]] %s1519_s9  ;;  %v376_v61 = vadd.f32 %v375_v41, %v373_v38 }
  0xa7   :  { %s2290_s20 = sld [smem:[#allocation25_spill]]  ;;  %v383_v35 = vstv %s2286_s25 }
  0xa8   :  { %s1535_s9 = sld [smem:[#allocation2 + $0x5b]]  ;;  %v384_v45 = vmul.f32 %v383_v35, %v1403_v0 }
  0xa9   :  { %s2292_s29 = sld [smem:[#allocation20_spill]]  ;;  %v385_v36 = vstv %s2287_s4 }
  0xaa   :  { %2288 = sst [smem:[#allocation19_spill]] %s1527_s1  ;;  %v386_v46 = vmul.f32 %v385_v36, %v1405_v1  ;;  %v370_v36 = vadd.f32 %v369_v34, %v368_v7 }
  0xab   :  { %s2293_s22 = sld [smem:[#allocation27_spill]]  ;;  %v394_v39 = vstv %s2289_s5 }
  0xac   :  { %s2294_s24 = sld [smem:[#allocation28_spill]]  ;;  %v395_v50 = vmul.f32 %v394_v39, %v1403_v0  ;;  %v387_v62 = vadd.f32 %v386_v46, %v384_v45  ;;  %v1646_v55 = vmax.f32 %v370_v36, 0.0 }
  0xad   :  { %s1543_s1 = sld [smem:[#allocation2 + $0x1c]]  ;;  %v396_v40 = vstv %s2290_s20 }
  0xae   :  { %2291 = sst [smem:[#allocation21_spill]] %s1535_s9  ;;  %v397_v51 = vmul.f32 %v396_v40, %v1405_v1 }
  0xaf   :  { %s2295_s23 = sld [smem:[#allocation30_spill]]  ;;  %v377_v42 = vstv %s2292_s29 }
  0xb0   :  { %s2296_s30 = sld [smem:[#allocation31_spill]]  ;;  %v378_v57 = vmul.f32 %v377_v42, %v1421_v8  ;;  %v398_v3 = vadd.f32 %v397_v51, %v395_v50  ;;  %v1638_v51 = vmax.f32 %v1539_v30, 0.0 }
  0xb1   :  { %s1548_s28 = sld [smem:[#allocation2 + $0x3c]]  ;;  %v405_v43 = vstv %s2293_s22 }
  0xb2   :  { %s2297_s9 = sld [smem:[#allocation23_spill]]  ;;  %v407_v44 = vstv %s2294_s24  ;;  %v406_v53 = vmul.f32 %v405_v43, %v1403_v0  ;;  %v379_v18 = vadd.f32 %v378_v57, %v376_v61 }
  0xb3   :  { %s2298_s6 = sld [smem:[#allocation26_spill]]  ;;  %v408_v54 = vmul.f32 %v407_v44, %v1405_v1  ;;  %v1629_v44 = vmax.f32 %v1537_v29, 0.0 }
  0xb4   :  { %s1553_s13 = sld [smem:[#allocation2 + $0x69]] }
  0xb5   :  { %s2299_s3 = sld [smem:[#allocation33_spill]]  ;;  %v416_v47 = vstv %s2295_s23  ;;  %v409_v9 = vadd.f32 %v408_v54, %v406_v53  ;;  %v1644_v54 = vmax.f32 %v359_v17, 0.0 }
  0xb6   :  { %s1559_s25 = sld [smem:[#allocation2 + $0x6a]]  ;;  %v418_v48 = vstv %s2296_s30  ;;  %v417_v59 = vmul.f32 %v416_v47, %v1403_v0 }
  0xb7   :  { %s2300_s4 = sld [smem:[#allocation29_spill]]  ;;  %v419_v60 = vmul.f32 %v418_v48, %v1405_v1 }
  0xb8   :  { %s1565_s5 = sld [smem:[#allocation2 + $0x5c]]  ;;  %v388_v49 = vstv %s2297_s9 }
  0xb9   :  { %s2301_s29 = sld [smem:[#allocation32_spill]]  ;;  %v399_v52 = vstv %s2298_s6  ;;  %v389_v63 = vmul.f32 %v388_v49, %v1421_v8  ;;  %v420_v12 = vadd.f32 %v419_v60, %v417_v59 }
  0xba   :  { %s1571_s22 = sld [smem:[#allocation2 + $0x6b]]  ;;  %v400_v4 = vmul.f32 %v399_v52, %v1421_v8  ;;  %v380_v19 = vstv %s1553_s13 }
  0xbb   :  { %v429_v56 = vstv %s2299_s3  ;;  %s1577_s24 = sld [smem:[#allocation2 + $0x6c]]  ;;  %v390_v23 = vadd.f32 %v389_v63, %v387_v62  ;;  %v381_v40 = vadd.f32 %v380_v19, %v379_v18  ;;  %v493_v19 = vstv %s1393_s19 }
  0xbc   :  { %s2302_s30 = sld [smem:[#allocation34_spill]]  ;;  %v430_v6 = vmul.f32 %v429_v56, %v1405_v1  ;;  %v391_v20 = vstv %s1559_s25  ;;  %v401_v24 = vadd.f32 %v400_v4, %v398_v3 }
  0xbd   :  { %v410_v58 = vstv %s2300_s4  ;;  %s1583_s23 = sld [smem:[#allocation2 + $0x6d]]  ;;  %v392_v45 = vadd.f32 %v391_v20, %v390_v23  ;;  %v1648_v56 = vmax.f32 %v381_v40, 0.0  ;;  %v495_v20 = vstv %s1395_s2 }
  0xbe   :  { %s2303_s6 = sld [smem:[#allocation35_spill]]  ;;  %v411_v10 = vmul.f32 %v410_v58, %v1421_v8  ;;  %v431_v28 = vadd.f32 %v430_v6, %v428_v5 }
  0xbf   :  { %s2304_s9 = sld [smem:[#allocation36_spill]]  ;;  %v421_v2 = vstv %s2301_s29  ;;  %v1653_v30 = vmax.f32 %v392_v45, 0.0 }
  0xc0   :  { %s1587_s10 = sld [smem:[#allocation2 + $0x1d]]  ;;  %v422_v14 = vmul.f32 %v421_v2, %v1421_v8  ;;  %v402_v32 = vstv %s1571_s22  ;;  %v412_v35 = vadd.f32 %v411_v10, %v409_v9  ;;  %v465_v10 = vstv %s1379_s11 }
  0xc1   :  { %s1592_s20 = sld [smem:[#allocation2 + $0x6e]]  ;;  %v413_v37 = vstv %s1577_s24  ;;  %v403_v46 = vadd.f32 %v402_v32, %v401_v24  ;;  %v466_v24 = vmul.f32 %v465_v10, %v1421_v8 }
  0xc2   :  { %v432_v11 = vstv %s2302_s30  ;;  %s1596_s3 = sld [smem:[#allocation2 + $0x3d]]  ;;  %v423_v38 = vadd.f32 %v422_v14, %v420_v12  ;;  %v414_v34 = vadd.f32 %v413_v37, %v412_v35 }
  0xc3   :  { %s1601_s4 = sld [smem:[#allocation2 + $0x5d]]  ;;  %v433_v31 = vmul.f32 %v432_v11, %v1421_v8  ;;  %v424_v41 = vstv %s1583_s23  ;;  %v1659_v61 = vmax.f32 %v403_v46, 0.0 }
  0xc4   :  { %v438_v15 = vstv %s2303_s6  ;;  %s2306_s29 = sld [smem:[#allocation37_spill]]  ;;  %v425_v29 = vadd.f32 %v424_v41, %v423_v38  ;;  %v1661_v62 = vmax.f32 %v414_v34, 0.0  ;;  %v494_v38 = vmul.f32 %v493_v19, %v1403_v0 }
  0xc5   :  { %v440_v16 = vstv %s2304_s9  ;;  %s2307_s30 = sld [smem:[#allocation38_spill]]  ;;  %v439_v27 = vmul.f32 %v438_v15, %v1403_v0  ;;  %v434_v47 = vadd.f32 %v433_v31, %v431_v28  ;;  %v482_v15 = vstv %s1387_s16 }
  0xc6   :  { %2305 = sst [smem:[#allocation22_spill]] %s1587_s10  ;;  %v441_v33 = vmul.f32 %v440_v16, %v1405_v1  ;;  %v1666_v3 = vmax.f32 %v425_v29, 0.0  ;;  %v484_v16 = vstv %s1389_s17  ;;  %v517_v34 = vstv %s1415_s14 }
  0xc7   :  { %s1607_s10 = sld [smem:[#allocation2 + $0x1e]]  ;;  %v435_v48 = vstv %s1592_s20 }
  0xc8   :  { %s2308_s6 = sld [smem:[#allocation39_spill]]  ;;  %v442_v49 = vadd.f32 %v441_v33, %v439_v27  ;;  %v436_v58 = vadd.f32 %v435_v48, %v434_v47  ;;  %v483_v27 = vmul.f32 %v482_v15, %v1403_v0  ;;  %v485_v33 = vmul.f32 %v484_v16, %v1405_v1 }
  0xc9   :  { %s1610_s9 = sld [smem:[#allocation2 + $0x6f]]  ;;  %v515_v47 = vstv %s1411_s18 }
  0xca   :  { %s1615_s13 = sld [smem:[#allocation2 + $0x70]]  ;;  %v443_v39 = vstv %s2306_s29  ;;  %v1678_v12 = vmax.f32 %v436_v58, 0.0 }
  0xcb   :  { %s1621_s8 = sld [smem:[#allocation2 + $0x3e]]  ;;  %v449_v42 = vstv %s2307_s30  ;;  %v444_v50 = vmul.f32 %v443_v39, %v1421_v8  ;;  %v496_v39 = vmul.f32 %v495_v20, %v1405_v1 }
  0xcc   :  { %s1626_s25 = sld [smem:[#allocation2 + $0x5e]]  ;;  %v450_v52 = vmul.f32 %v449_v42, %v1403_v0  ;;  %v504_v42 = vstv %s1399_s12 }
  0xcd   :  { %s2310_s22 = sld [smem:[#allocation40_spill]]  ;;  %v445_v63 = vadd.f32 %v444_v50, %v442_v49  ;;  %v486_v50 = vadd.f32 %v485_v33, %v483_v27 }
  0xce   :  { %v451_v43 = vstv %s2308_s6  ;;  %s1631_s7 = sld [smem:[#allocation2 + $0x71]] }
  0xcf   :  { %s2311_s24 = sld [smem:[#allocation41_spill]]  ;;  %v452_v53 = vmul.f32 %v451_v43, %v1405_v1  ;;  %v446_v2 = vstv %s1610_s9 }
  0xd0   :  { %s2312_s29 = sld [smem:[#allocation42_spill]]  ;;  %v457_v6 = vstv %s1615_s13  ;;  %v447_v17 = vadd.f32 %v446_v2, %v445_v63  ;;  %v516_v63 = vmul.f32 %v515_v47, %v1403_v0  ;;  %v518_v2 = vmul.f32 %v517_v34, %v1405_v1 }
  0xd1   :  { %s1635_s23 = sld [smem:[#allocation2 + $0x1f]]  ;;  %v453_v4 = vadd.f32 %v452_v53, %v450_v52  ;;  %v497_v52 = vadd.f32 %v496_v39, %v494_v38 }
  0xd2   :  { %2309 = sst [smem:[#allocation24_spill]] %s1626_s25  ;;  %v1706_v40 = vmax.f32 %v447_v17, 0.0 }
  0xd3   :  { %s1642_s30 = sld [smem:[#allocation2 + $0x3f]]  ;;  %v454_v57 = vstv %s2310_s22 }
  0xd4   :  { %s1651_s20 = sld [smem:[#allocation2 + $0x72]]  ;;  %v455_v5 = vmul.f32 %v454_v57, %v1421_v8  ;;  %v468_v18 = vstv %s1631_s7  ;;  %v505_v57 = vmul.f32 %v504_v42, %v1403_v0 }
  0xd5   :  { %v460_v59 = vstv %s2311_s24  ;;  %s2315_s6 = sld [smem:[#allocation43_spill]] }
  0xd6   :  { %v462_v60 = vstv %s2312_s29  ;;  %s1664_s22 = sld [smem:[#allocation2 + $0x73]]  ;;  %v461_v7 = vmul.f32 %v460_v59, %v1403_v0  ;;  %v456_v23 = vadd.f32 %v455_v5, %v453_v4  ;;  %v526_v4 = vstv %s1424_s0 }
  0xd7   :  { %2313 = sst [smem:[#allocation25_spill]] %s1635_s23  ;;  %v463_v9 = vmul.f32 %v462_v60, %v1405_v1  ;;  %v509_v60 = vstv %s1409_s15  ;;  %v528_v5 = vstv %s1431_s21 }
  0xd8   :  { %s1657_s23 = sld [smem:[#allocation2 + $0x5f]]  ;;  %v1713_v45 = vadd.f32 %v457_v6, %v456_v23  ;;  %v537_v6 = vstv %s1460_s27  ;;  %v510_v19 = vmul.f32 %v509_v60, %v1421_v8  ;;  %v529_v20 = vmul.f32 %v528_v5, %v1405_v1 }
  0xd9   :  { %2314 = sst [smem:[#allocation20_spill]] %s1642_s30  ;;  %v464_v32 = vadd.f32 %v463_v9, %v461_v7  ;;  %v539_v7 = vstv %s1466_s26  ;;  %v538_v23 = vmul.f32 %v537_v6, %v1403_v0 }
  0xda   :  { %s2317_s30 = sld [smem:[#allocation44_spill]]  ;;  %v479_v36 = vstv %s1651_s20 }
  0xdb   :  { %s1670_s24 = sld [smem:[#allocation2 + $0x74]]  ;;  %v471_v11 = vstv %s2315_s6  ;;  %v467_v48 = vadd.f32 %v466_v24, %v464_v32  ;;  %v540_v24 = vmul.f32 %v539_v7, %v1405_v1 }
  0xdc   :  { %s2318_s29 = sld [smem:[#allocation45_spill]]  ;;  %v472_v28 = vmul.f32 %v471_v11, %v1403_v0  ;;  %v490_v59 = vstv %s1664_s22 }
  0xdd   :  { %s1676_s9 = sld [smem:[#allocation2 + $0x75]]  ;;  %v469_v9 = vadd.f32 %v468_v18, %v467_v48  ;;  %v527_v18 = vmul.f32 %v526_v4, %v1403_v0  ;;  %v541_v34 = vadd.f32 %v540_v24, %v538_v23 }
  0xde   :  { %2316 = sst [smem:[#allocation27_spill]] %s1657_s23 }
  0xdf   :  { %s1683_s23 = sld [smem:[#allocation2 + $0x76]] }
  0xe0   :  { %v473_v14 = vstv %s2317_s30  ;;  %s2319_s13 = sld [smem:[#allocation46_spill]] }
  0xe1   :  { %s1688_s25 = sld [smem:[#allocation2 + $0x77]]  ;;  %v474_v35 = vmul.f32 %v473_v14, %v1405_v1  ;;  %v501_v11 = vstv %s1670_s24 }
  0xe2   :  { %s2320_s11 = sld [smem:[#allocation47_spill]]  ;;  %v476_v31 = vstv %s2318_s29 }
  0xe3   :  { %s2321_s30 = sld [smem:[#allocation48_spill]]  ;;  %v477_v46 = vmul.f32 %v476_v31, %v1421_v8  ;;  %v475_v49 = vadd.f32 %v474_v35, %v472_v28  ;;  %v519_v28 = vadd.f32 %v518_v2, %v516_v63 }
  0xe4   :  { %s1693_s16 = sld [smem:[#allocation2 + $0x78]] }
  0xe5   :  { %s1698_s2 = sld [smem:[#allocation2 + $0x79]]  ;;  %v478_v10 = vadd.f32 %v477_v46, %v475_v49  ;;  %v530_v46 = vadd.f32 %v529_v20, %v527_v18  ;;  %v523_v60 = vstv %s1683_s23 }
  0xe6   :  { %v487_v37 = vstv %s2319_s13  ;;  %s1704_s19 = sld [smem:[#allocation2 + $0x7a]] }
  0xe7   :  { %s1711_s17 = sld [smem:[#allocation2 + $0x7b]]  ;;  %v488_v29 = vmul.f32 %v487_v37, %v1421_v8  ;;  %v480_v39 = vadd.f32 %v479_v36, %v478_v10  ;;  %v534_v63 = vstv %s1688_s25 }
  0xe8   :  { %v498_v41 = vstv %s2320_s11  ;;  %s1718_s7 = sld [smem:[#allocation2 + $0x7c]] }
  0xe9   :  { %v506_v43 = vstv %s2321_s30  ;;  %s1721_s12 = sld [smem:[#allocation2 + $0x7d]]  ;;  %v499_v53 = vmul.f32 %v498_v41, %v1421_v8  ;;  %v489_v15 = vadd.f32 %v488_v29, %v486_v50 }
  0xea   :  { %s2323_s18 = sld [smem:[#allocation49_spill]]  ;;  %v507_v58 = vmul.f32 %v506_v43, %v1405_v1  ;;  %v512_v43 = vstv %s1676_s9  ;;  %v545_v2 = vstv %s1693_s16 }
  0xeb   :  { %s1726_s14 = sld [smem:[#allocation2 + $0x7e]]  ;;  %v500_v16 = vadd.f32 %v499_v53, %v497_v52  ;;  %v491_v41 = vadd.f32 %v490_v59, %v489_v15 }
  0xec   :  { %s1732_s20 = sld [smem:[#allocation2 + $0x7f]]  ;;  %v508_v17 = vadd.f32 %v507_v58, %v505_v57 }
  0xed   :  { %s1738_s6 = sld [smem:[#allocation2 + $0x80]]  ;;  %v502_v52 = vadd.f32 %v501_v11, %v500_v16  ;;  %v1795_v16 = vmax.f32 %v1713_v45, 0.0  ;;  %v1803_v20 = vmax.f32 %v491_v41, 0.0  ;;  %v567_v41 = vstv %s1704_s19 }
  0xee   :  { %s2326_s29 = sld [smem:[#allocation50_spill]]  ;;  %v511_v42 = vadd.f32 %v510_v19, %v508_v17  ;;  %v1797_v17 = vmax.f32 %v469_v9, 0.0  ;;  %v1799_v19 = vmax.f32 %v480_v39, 0.0  ;;  %v581_v9 = vstv %s1543_s1 }
  0xef   :  { %2322 = sst [smem:[#allocation28_spill]] %s1721_s12  ;;  %v556_v39 = vstv %s1698_s2 }
  0xf0   :  { %s2327_s13 = sld [smem:[#allocation11_spill]]  ;;  %v520_v14 = vstv %s2323_s18  ;;  %v513_v59 = vadd.f32 %v512_v43, %v511_v42 }
  0xf1   :  { %2324 = sst [smem:[#allocation30_spill]] %s1726_s14  ;;  %v521_v31 = vmul.f32 %v520_v14, %v1421_v8 }
  0xf2   :  { %2325 = sst [smem:[#allocation31_spill]] %s1732_s20 }
  0xf3   :  { %s1742_s22 = sld [smem:[#allocation2 + $0x83]]  ;;  %v522_v53 = vadd.f32 %v521_v31, %v519_v28 }
  0xf4   :  { %s2328_s15 = sld [smem:[#allocation12_spill]]  ;;  %v531_v32 = vstv %s2326_s29 }
  0xf5   :  { %s2329_s11 = sld [smem:[#allocation13_spill]]  ;;  %v532_v47 = vmul.f32 %v531_v32, %v1421_v8  ;;  %v524_v18 = vadd.f32 %v523_v60, %v522_v53  ;;  %v583_v32 = vstv %s1548_s28 }
  0xf6   :  { %s2330_s30 = sld [smem:[#allocation15_spill]]  ;;  %v542_v35 = vstv %s2327_s13 }
  0xf7   :  { %s2331_s0 = sld [smem:[#allocation16_spill]]  ;;  %v543_v48 = vmul.f32 %v542_v35, %v1421_v8  ;;  %v533_v4 = vadd.f32 %v532_v47, %v530_v46  ;;  %v1814_v35 = vmax.f32 %v502_v52, 0.0  ;;  %v582_v46 = vmul.f32 %v581_v9, %v1403_v0 }
  0xf8   :  { %s1745_s21 = sld [smem:[#allocation2 + $0x86]]  ;;  %v584_v47 = vmul.f32 %v583_v32, %v1405_v1 }
  0xf9   :  { %s1751_s27 = sld [smem:[#allocation2 + $0x89]]  ;;  %v544_v5 = vadd.f32 %v543_v48, %v541_v34  ;;  %v535_v45 = vadd.f32 %v534_v63, %v533_v4  ;;  %v586_v34 = vstv %s1565_s5 }
  0xfa   :  { %s1756_s26 = sld [smem:[#allocation2 + $0x8c]]  ;;  %v548_v27 = vstv %s2328_s15  ;;  %v585_v4 = vadd.f32 %v584_v47, %v582_v46 }
  0xfb   :  { %v550_v33 = vstv %s2329_s11  ;;  %s1762_s24 = sld [smem:[#allocation2 + $0x8f]]  ;;  %v549_v36 = vmul.f32 %v548_v27, %v1403_v0  ;;  %v546_v31 = vadd.f32 %v545_v2, %v544_v5  ;;  %v1816_v27 = vmax.f32 %v513_v59, 0.0 }
  0xfc   :  { %v559_v37 = vstv %s2330_s30  ;;  %s2332_s18 = sld [smem:[#allocation14_spill]]  ;;  %v551_v49 = vmul.f32 %v550_v33, %v1405_v1  ;;  %v1832_v48 = vmax.f32 %v535_v45, 0.0  ;;  %v603_v45 = vstv %s1607_s10 }
  0xfd   :  { %v561_v38 = vstv %s2331_s0  ;;  %s2333_s20 = sld [smem:[#allocation17_spill]]  ;;  %v560_v50 = vmul.f32 %v559_v37, %v1403_v0 }
  0xfe   :  { %s1765_s14 = sld [smem:[#allocation2 + $0x92]]  ;;  %v562_v29 = vmul.f32 %v561_v38, %v1405_v1  ;;  %v552_v10 = vadd.f32 %v551_v49, %v549_v36  ;;  %v1820_v38 = vmax.f32 %v524_v18, 0.0  ;;  %v1834_v36 = vmax.f32 %v546_v31, 0.0 }
  0xff   :  { %s1769_s29 = sld [smem:[#allocation2 + $0x95]]  ;;  %v578_v49 = vstv %s1711_s17  ;;  %v630_v60 = vstv %s1745_s21  ;;  %v633_v63 = vstv %s1751_s27 }
 0x100   :  { %s2334_s13 = sld [smem:[#allocation18_spill]]  ;;  %v563_v14 = vadd.f32 %v562_v29, %v560_v50  ;;  %v625_v50 = vstv %s1738_s6 }
 0x101   :  { %s2335_s9 = sld [smem:[#allocation19_spill]]  ;;  %v626_v53 = vmul.f32 %v625_v50, %v1511_v13 }
 0x102   :  { %s1775_s15 = sld [smem:[#allocation2 + $0x98]]  ;;  %v553_v57 = vstv %s2332_s18 }
 0x103   :  { %v564_v58 = vstv %s2333_s20  ;;  %s1779_s11 = sld [smem:[#allocation2 + $0x9b]]  ;;  %v554_v11 = vmul.f32 %v553_v57, %v1421_v8  ;;  %v627_v57 = vstv %s1742_s22 }
 0x104   :  { %s1784_s30 = sld [smem:[#allocation2 + $0x9e]]  ;;  %v565_v15 = vmul.f32 %v564_v58, %v1421_v8  ;;  %v587_v58 = vmul.f32 %v586_v34, %v1421_v8  ;;  %v628_v59 = vmul.f32 %v627_v57, %v1521_v21  ;;  %v604_v34 = vmul.f32 %v603_v45, %v1403_v0 }
 0x105   :  { %s2336_s0 = sld [smem:[#allocation21_spill]]  ;;  %v555_v33 = vadd.f32 %v554_v11, %v552_v10  ;;  %v634_v11 = vmul.f32 %v633_v63, %v1529_v25 }
 0x106   :  { %v570_v6 = vstv %s2334_s13  ;;  %s1788_s12 = sld [smem:[#allocation2 + $0xa1]]  ;;  %v566_v37 = vadd.f32 %v565_v15, %v563_v14  ;;  %v629_v10 = vadd.f32 %v628_v59, %v626_v53  ;;  %v636_v14 = vstv %s1756_s26 }
 0x107   :  { %v572_v7 = vstv %s2335_s9  ;;  %s1792_s23 = sld [smem:[#allocation2 + $0xa4]]  ;;  %v571_v23 = vmul.f32 %v570_v6, %v1403_v0  ;;  %v557_v29 = vadd.f32 %v556_v39, %v555_v33  ;;  %v631_v6 = vmul.f32 %v630_v60, %v1523_v22 }
 0x108   :  { %s1801_s25 = sld [smem:[#allocation2 + $0xa7]]  ;;  %v573_v24 = vmul.f32 %v572_v7, %v1405_v1  ;;  %v568_v52 = vadd.f32 %v567_v41, %v566_v37  ;;  %v594_v7 = vstv %s1596_s3  ;;  %v637_v9 = vmul.f32 %v636_v14, %v1531_v26 }
 0x109   :  { %s1808_s16 = sld [smem:[#allocation2 + $0xaa]]  ;;  %v1859_v15 = vmax.f32 %v557_v29, 0.0  ;;  %v632_v31 = vadd.f32 %v631_v6, %v629_v10  ;;  %v588_v32 = vadd.f32 %v587_v58, %v585_v4  ;;  %v595_v37 = vmul.f32 %v594_v7, %v1405_v1 }
 0x10a   :  { %s1812_s20 = sld [smem:[#allocation2 + $0xad]]  ;;  %v574_v43 = vadd.f32 %v573_v24, %v571_v23  ;;  %v1861_v18 = vmax.f32 %v568_v52, 0.0  ;;  %v589_v23 = vstv %s1718_s7  ;;  %v639_v24 = vstv %s1762_s24 }
 0x10b   :  { %v575_v28 = vstv %s2336_s0  ;;  %s1818_s18 = sld [smem:[#allocation2 + $0xb0]]  ;;  %v642_v39 = vstv %s1765_s14  ;;  %v640_v46 = vmul.f32 %v639_v24, %v1629_v44  ;;  %v645_v29 = vstv %s1769_s29 }
 0x10c   :  { %v576_v42 = vmul.f32 %v575_v28, %v1421_v8  ;;  %s1825_s1 = sld [smem:[#allocation2 + $0xb3]]  ;;  %v597_v28 = vstv %s1601_s4  ;;  %v643_v57 = vmul.f32 %v642_v39, %v1638_v51  ;;  %v590_v58 = vadd.f32 %v589_v23, %v588_v32 }
 0x10d   :  { %s1830_s28 = sld [smem:[#allocation2 + $0xb6]]  ;;  %v598_v47 = vmul.f32 %v597_v28, %v1421_v8  ;;  %v648_v63 = vstv %s1775_s15  ;;  %v646_v6 = vmul.f32 %v645_v29, %v1644_v54  ;;  %v651_v14 = vstv %s1779_s11 }
 0x10e   :  { %s2337_s2 = sld [smem:[#allocation22_spill]]  ;;  %v577_v2 = vadd.f32 %v576_v42, %v574_v43  ;;  %v605_v42 = vstv %s1621_s8  ;;  %v635_v43 = vadd.f32 %v634_v11, %v632_v31  ;;  %v649_v45 = vmul.f32 %v648_v63, %v1646_v55 }
 0x10f   :  { %s1838_s19 = sld [smem:[#allocation2 + $0xb9]]  ;;  %v606_v60 = vmul.f32 %v605_v42, %v1405_v1  ;;  %v652_v39 = vmul.f32 %v651_v14, %v1648_v56  ;;  %v657_v42 = vstv %s1788_s12  ;;  %v660_v29 = vstv %s1792_s23 }
 0x110   :  { %s1842_s13 = sld [smem:[#allocation2 + $0xbc]]  ;;  %v579_v41 = vadd.f32 %v578_v49, %v577_v2  ;;  %v638_v49 = vadd.f32 %v637_v9, %v635_v43  ;;  %v654_v9 = vstv %s1784_s30 }
 0x111   :  { %s1848_s5 = sld [smem:[#allocation2 + $0xbf]] }
 0x112   :  { %s1852_s17 = sld [smem:[#allocation2 + $0xc2]]  ;;  %v1907_v23 = vmax.f32 %v579_v41, 0.0 }
 0x113   :  { %s1857_s6 = sld [smem:[#allocation2 + $0xc5]] }
 0x114   :  { %v592_v5 = vstv %s2337_s2  ;;  %s1865_s22 = sld [smem:[#allocation2 + $0xc8]] }
 0x115   :  { %s2338_s21 = sld [smem:[#allocation24_spill]]  ;;  %v593_v33 = vmul.f32 %v592_v5, %v1403_v0  ;;  %v641_v5 = vadd.f32 %v640_v46, %v638_v49 }
 0x116   :  { %s1870_s3 = sld [smem:[#allocation2 + $0x81]] }
 0x117   :  { %s2339_s27 = sld [smem:[#allocation25_spill]]  ;;  %v596_v59 = vadd.f32 %v595_v37, %v593_v33  ;;  %v644_v28 = vadd.f32 %v643_v57, %v641_v5  ;;  %v663_v5 = vstv %s1801_s25 }
 0x118   :  { %s2340_s26 = sld [smem:[#allocation20_spill]] }
 0x119   :  { %s1875_s7 = sld [smem:[#allocation2 + $0x84]]  ;;  %v599_v31 = vadd.f32 %v598_v47, %v596_v59  ;;  %v647_v37 = vadd.f32 %v646_v6, %v644_v28 }
 0x11a   :  { %s1879_s10 = sld [smem:[#allocation2 + $0x87]] }
 0x11b   :  { %s2341_s4 = sld [smem:[#allocation28_spill]]  ;;  %v608_v50 = vstv %s2338_s21  ;;  %v650_v47 = vadd.f32 %v649_v45, %v647_v37 }
 0x11c   :  { %s2342_s24 = sld [smem:[#allocation30_spill]]  ;;  %v609_v24 = vmul.f32 %v608_v50, %v1421_v8  ;;  %v725_v43 = vstv %s1870_s3 }
 0x11d   :  { %s1885_s9 = sld [smem:[#allocation2 + $0x8a]]  ;;  %v614_v52 = vstv %s2339_s27  ;;  %v653_v57 = vadd.f32 %v652_v39, %v650_v47  ;;  %v664_v39 = vmul.f32 %v663_v5, %v1666_v3  ;;  %v669_v47 = vstv %s1812_s20 }
 0x11e   :  { %v616_v53 = vstv %s2340_s26  ;;  %s2343_s14 = sld [smem:[#allocation27_spill]]  ;;  %v615_v7 = vmul.f32 %v614_v52, %v1403_v0  ;;  %v1913_v0 = vmax.f32 %v590_v58, 0.0  ;;  %v658_v58 = vmul.f32 %v657_v42, %v1659_v61 }
 0x11f   :  { %s1890_s8 = sld [smem:[#allocation2 + $0x8d]]  ;;  %v617_v10 = vmul.f32 %v616_v53, %v1405_v1  ;;  %v607_v1 = vadd.f32 %v606_v60, %v604_v34  ;;  %v727_v46 = vstv %s1875_s7  ;;  %v655_v34 = vmul.f32 %v654_v9, %v1653_v30 }
 0x120   :  { %s1894_s0 = sld [smem:[#allocation2 + $0xcb]]  ;;  %v728_v50 = vmul.f32 %v727_v46, %v1521_v21  ;;  %v730_v52 = vstv %s1879_s10  ;;  %v681_v5 = vstv %s1838_s19 }
 0x121   :  { %v600_v2 = vstv %s2341_s4  ;;  %s1899_s29 = sld [smem:[#allocation2 + $0x90]]  ;;  %v618_v41 = vadd.f32 %v617_v10, %v615_v7  ;;  %v731_v60 = vmul.f32 %v730_v52, %v1523_v22  ;;  %v656_v10 = vadd.f32 %v655_v34, %v653_v57 }
 0x122   :  { %v611_v4 = vstv %s2342_s24  ;;  %s2344_s2 = sld [smem:[#allocation31_spill]]  ;;  %v601_v63 = vadd.f32 %v600_v2, %v599_v31  ;;  %v610_v45 = vadd.f32 %v609_v24, %v607_v1  ;;  %v666_v2 = vstv %s1808_s16 }
 0x123   :  { %s1905_s21 = sld [smem:[#allocation2 + $0xce]]  ;;  %v733_v53 = vstv %s1885_s9  ;;  %v659_v37 = vadd.f32 %v658_v58, %v656_v10  ;;  %v672_v24 = vstv %s1818_s18  ;;  %v675_v52 = vstv %s1825_s1 }
 0x124   :  { %v619_v11 = vstv %s2343_s14  ;;  %s1911_s15 = sld [smem:[#allocation2 + $0x93]]  ;;  %v734_v6 = vmul.f32 %v733_v53, %v1529_v25  ;;  %v1960_v46 = vmax.f32 %v601_v63, 0.0  ;;  %v670_v57 = vmul.f32 %v669_v47, %v1706_v40 }
 0x125   :  { %s1916_s11 = sld [smem:[#allocation2 + $0xd1]]  ;;  %v620_v32 = vmul.f32 %v619_v11, %v1421_v8  ;;  %v726_v8 = vmul.f32 %v725_v43, %v1511_v13  ;;  %v736_v49 = vstv %s1890_s8  ;;  %v661_v11 = vmul.f32 %v660_v29, %v1661_v62 }
 0x126   :  { %s1921_s27 = sld [smem:[#allocation2 + $0x96]]  ;;  %v737_v28 = vmul.f32 %v736_v49, %v1531_v26  ;;  %v678_v63 = vstv %s1830_s28 }
 0x127   :  { %s1926_s26 = sld [smem:[#allocation2 + $0xd4]]  ;;  %v729_v59 = vadd.f32 %v728_v50, %v726_v8  ;;  %v739_v7 = vstv %s1899_s29  ;;  %v621_v9 = vadd.f32 %v620_v32, %v618_v41  ;;  %v662_v32 = vadd.f32 %v661_v11, %v659_v37 }
 0x128   :  { %v622_v33 = vstv %s2344_s2  ;;  %s1931_s30 = sld [smem:[#allocation2 + $0x99]]  ;;  %v740_v43 = vmul.f32 %v739_v7, %v1629_v44  ;;  %v667_v41 = vmul.f32 %v666_v2, %v1678_v12  ;;  %v612_v50 = vadd.f32 %v611_v4, %v610_v45 }
 0x129   :  { %s1937_s12 = sld [smem:[#allocation2 + $0xd7]]  ;;  %v732_v14 = vadd.f32 %v731_v60, %v729_v59  ;;  %v623_v29 = vadd.f32 %v622_v33, %v621_v9  ;;  %v665_v49 = vadd.f32 %v664_v39, %v662_v32  ;;  %v673_v60 = vmul.f32 %v672_v24, %v1795_v16 }
 0x12a   :  { %s1941_s3 = sld [smem:[#allocation2 + $0x9c]]  ;;  %v742_v31 = vstv %s1911_s15  ;;  %v1991_v11 = vmax.f32 %v612_v50, 0.0  ;;  %v679_v2 = vmul.f32 %v678_v63, %v1799_v19  ;;  %v682_v39 = vmul.f32 %v681_v5, %v1803_v20 }
 0x12b   :  { %s1946_s23 = sld [smem:[#allocation2 + $0xda]]  ;;  %v735_v42 = vadd.f32 %v734_v6, %v732_v14  ;;  %v743_v8 = vmul.f32 %v742_v31, %v1638_v51  ;;  %v668_v33 = vadd.f32 %v667_v41, %v665_v49  ;;  %v684_v6 = vstv %s1842_s13 }
 0x12c   :  { %s1950_s7 = sld [smem:[#allocation2 + $0x9f]]  ;;  %v745_v1 = vstv %s1921_s27  ;;  %v1993_v14 = vmax.f32 %v623_v29, 0.0  ;;  %v699_v50 = vstv %s1894_s0 }
 0x12d   :  { %s1954_s25 = sld [smem:[#allocation2 + $0xdd]]  ;;  %v738_v34 = vadd.f32 %v737_v28, %v735_v42  ;;  %v746_v59 = vmul.f32 %v745_v1, %v1644_v54  ;;  %v676_v28 = vmul.f32 %v675_v52, %v1797_v17  ;;  %v671_v9 = vadd.f32 %v670_v57, %v668_v33 }
 0x12e   :  { %s1958_s10 = sld [smem:[#allocation2 + $0xa2]]  ;;  %v748_v53 = vstv %s1931_s30  ;;  %v685_v42 = vmul.f32 %v684_v6, %v1814_v35  ;;  %v690_v1 = vstv %s1852_s17 }
 0x12f   :  { %s1965_s16 = sld [smem:[#allocation2 + $0xa5]]  ;;  %v741_v58 = vadd.f32 %v740_v43, %v738_v34  ;;  %v749_v10 = vmul.f32 %v748_v53, %v1646_v55  ;;  %v687_v43 = vstv %s1848_s5  ;;  %v674_v24 = vadd.f32 %v673_v60, %v671_v9 }
 0x130   :  { %s1969_s4 = sld [smem:[#allocation2 + $0xa8]]  ;;  %v751_v4 = vstv %s1941_s3  ;;  %v693_v34 = vstv %s1857_s6  ;;  %v702_v53 = vstv %s1905_s21  ;;  %v705_v60 = vstv %s1916_s11 }
 0x131   :  { %s1975_s20 = sld [smem:[#allocation2 + $0xab]]  ;;  %v744_v7 = vadd.f32 %v743_v8, %v741_v58  ;;  %v752_v37 = vmul.f32 %v751_v4, %v1648_v56  ;;  %v696_v8 = vstv %s1865_s22  ;;  %v677_v52 = vadd.f32 %v676_v28, %v674_v24 }
 0x132   :  { %s1979_s18 = sld [smem:[#allocation2 + $0xae]]  ;;  %v754_v45 = vstv %s1950_s7  ;;  %v688_v58 = vmul.f32 %v687_v43, %v1816_v27  ;;  %v694_v4 = vmul.f32 %v693_v34, %v1832_v48  ;;  %v2038_v28 = vmul.f32 %v702_v53, %v1861_v18 }
 0x133   :  { %s1985_s24 = sld [smem:[#allocation2 + $0xb1]]  ;;  %v747_v31 = vadd.f32 %v746_v59, %v744_v7  ;;  %v755_v41 = vmul.f32 %v754_v45, %v1653_v30  ;;  %v691_v59 = vmul.f32 %v690_v1, %v1820_v38  ;;  %v680_v5 = vadd.f32 %v679_v2, %v677_v52 }
 0x134   :  { %s1989_s1 = sld [smem:[#allocation2 + $0xb4]]  ;;  %v757_v47 = vstv %s1958_s10  ;;  %v697_v7 = vmul.f32 %v696_v8, %v1834_v36  ;;  %v2044_v2 = vmul.f32 %v705_v60, %v1907_v23  ;;  %v708_v43 = vstv %s1926_s26 }
 0x135   :  { %s1997_s28 = sld [smem:[#allocation2 + $0x82]]  ;;  %v750_v32 = vadd.f32 %v749_v10, %v747_v31  ;;  %v760_v29 = vstv %s1965_s16  ;;  %v758_v57 = vmul.f32 %v757_v47, %v1659_v61  ;;  %v2035_v10 = vmul.f32 %v699_v50, %v1859_v15 }
 0x136   :  { %s2001_s19 = sld [smem:[#allocation2 + $0x85]]  ;;  %v763_v63 = vstv %s1969_s4  ;;  %v761_v6 = vmul.f32 %v760_v29, %v1661_v62  ;;  %v683_v9 = vadd.f32 %v682_v39, %v680_v5 }
 0x137   :  { %s2007_s13 = sld [smem:[#allocation2 + $0x88]]  ;;  %v753_v49 = vadd.f32 %v752_v37, %v750_v32  ;;  %v766_v45 = vstv %s1975_s20  ;;  %v764_v37 = vmul.f32 %v763_v63, %v1666_v3 }
 0x138   :  { %s2011_s9 = sld [smem:[#allocation2 + $0x8b]]  ;;  %v769_v47 = vstv %s1979_s18  ;;  %v686_v32 = vadd.f32 %v685_v42, %v683_v9  ;;  %v767_v39 = vmul.f32 %v766_v45, %v1678_v12 }
 0x139   :  { %s2017_s14 = sld [smem:[#allocation2 + $0xb7]]  ;;  %v756_v33 = vadd.f32 %v755_v41, %v753_v49  ;;  %v772_v8 = vstv %s1985_s24  ;;  %v770_v42 = vmul.f32 %v769_v47, %v1706_v40 }
 0x13a   :  { %s2021_s5 = sld [smem:[#allocation2 + $0x8e]]  ;;  %v689_v53 = vadd.f32 %v688_v58, %v686_v32 }
 0x13b   :  { %s2027_s17 = sld [smem:[#allocation2 + $0xba]]  ;;  %v759_v31 = vadd.f32 %v758_v57, %v756_v33  ;;  %v826_v24 = vstv %s1997_s28  ;;  %v711_v33 = vstv %s1937_s12 }
 0x13c   :  { %s2031_s6 = sld [smem:[#allocation2 + $0x91]]  ;;  %v828_v1 = vstv %s2001_s19  ;;  %v827_v34 = vmul.f32 %v826_v24, %v1511_v13  ;;  %v775_v13 = vstv %s1989_s1  ;;  %v692_v5 = vadd.f32 %v691_v59, %v689_v53 }
 0x13d   :  { %s2041_s22 = sld [smem:[#allocation2 + $0x94]]  ;;  %v762_v41 = vadd.f32 %v761_v6, %v759_v31  ;;  %v829_v50 = vmul.f32 %v828_v1, %v1521_v21  ;;  %v831_v29 = vstv %s2007_s13  ;;  %v773_v6 = vmul.f32 %v772_v8, %v1795_v16 }
 0x13e   :  { %s2047_s8 = sld [smem:[#allocation2 + $0xbd]]  ;;  %v834_v52 = vstv %s2011_s9  ;;  %v832_v57 = vmul.f32 %v831_v29, %v1523_v22  ;;  %v776_v59 = vmul.f32 %v775_v13, %v1797_v17  ;;  %v709_v24 = vmul.f32 %v708_v43, %v1913_v0 }
 0x13f   :  { %s2053_s0 = sld [smem:[#allocation2 + $0x97]]  ;;  %v765_v49 = vadd.f32 %v764_v37, %v762_v41  ;;  %v830_v60 = vadd.f32 %v829_v50, %v827_v34  ;;  %v835_v63 = vmul.f32 %v834_v52, %v1529_v25  ;;  %v778_v45 = vstv %s2017_s14 }
 0x140   :  { %s2057_s29 = sld [smem:[#allocation2 + $0xc0]]  ;;  %v837_v21 = vstv %s2021_s5  ;;  %v695_v25 = vadd.f32 %v694_v4, %v692_v5  ;;  %v712_v8 = vmul.f32 %v711_v33, %v1960_v46 }
 0x141   :  { %s2063_s2 = sld [smem:[#allocation2 + $0x9a]]  ;;  %v768_v58 = vadd.f32 %v767_v39, %v765_v49  ;;  %v833_v22 = vadd.f32 %v832_v57, %v830_v60  ;;  %v838_v9 = vmul.f32 %v837_v21, %v1531_v26  ;;  %v781_v1 = vstv %s2027_s17 }
 0x142   :  { %s2067_s21 = sld [smem:[#allocation2 + $0xc3]]  ;;  %v840_v31 = vstv %s2031_s6  ;;  %v698_v26 = vadd.f32 %v697_v7, %v695_v25  ;;  %v779_v39 = vmul.f32 %v778_v45, %v1799_v19  ;;  %v782_v52 = vmul.f32 %v781_v1, %v1803_v20 }
 0x143   :  { %s2072_s15 = sld [smem:[#allocation2 + $0x9d]]  ;;  %v771_v37 = vadd.f32 %v770_v42, %v768_v58  ;;  %v843_v47 = vstv %s2041_s22  ;;  %v836_v32 = vadd.f32 %v835_v63, %v833_v22  ;;  %v841_v41 = vmul.f32 %v840_v31, %v1629_v44 }
 0x144   :  { %s2076_s11 = sld [smem:[#allocation2 + $0xc6]]  ;;  %v784_v50 = vstv %s2047_s8  ;;  %v844_v29 = vmul.f32 %v843_v47, %v1638_v51  ;;  %v701_v44 = vadd.f32 %v2035_v10, %v698_v26  ;;  %v714_v49 = vstv %s1946_s23 }
 0x145   :  { %s2081_s27 = sld [smem:[#allocation2 + $0xa0]]  ;;  %v774_v4 = vadd.f32 %v773_v6, %v771_v37  ;;  %v846_v34 = vstv %s2053_s0  ;;  %v839_v43 = vadd.f32 %v838_v9, %v836_v32  ;;  %v785_v10 = vmul.f32 %v784_v50, %v1814_v35 }
 0x146   :  { %s2085_s26 = sld [smem:[#allocation2 + $0xc9]]  ;;  %v787_v42 = vstv %s2057_s29  ;;  %v847_v13 = vmul.f32 %v846_v34, %v1644_v54  ;;  %v704_v51 = vadd.f32 %v2038_v28, %v701_v44  ;;  %v717_v21 = vstv %s1954_s25 }
 0x147   :  { %s2090_s30 = sld [smem:[#allocation2 + $0xa3]]  ;;  %v777_v7 = vadd.f32 %v776_v59, %v774_v4  ;;  %v849_v53 = vstv %s2063_s2  ;;  %v842_v57 = vadd.f32 %v841_v41, %v839_v43  ;;  %v788_v28 = vmul.f32 %v787_v42, %v1816_v27 }
 0x148   :  { %s2094_s12 = sld [smem:[#allocation2 + $0xcc]]  ;;  %v790_v5 = vstv %s2067_s21  ;;  %v850_v58 = vmul.f32 %v849_v53, %v1646_v55  ;;  %v707_v54 = vadd.f32 %v2044_v2, %v704_v51  ;;  %v715_v22 = vmul.f32 %v714_v49, %v1991_v11 }
 0x149   :  { %s2099_s3 = sld [smem:[#allocation2 + $0xa6]]  ;;  %v780_v60 = vadd.f32 %v779_v39, %v777_v7  ;;  %v852_v63 = vstv %s2072_s15  ;;  %v845_v33 = vadd.f32 %v844_v29, %v842_v57  ;;  %v791_v2 = vmul.f32 %v790_v5, %v1820_v38 }
 0x14a   :  { %s2104_s7 = sld [smem:[#allocation2 + $0xcf]]  ;;  %v793_v9 = vstv %s2076_s11  ;;  %v853_v25 = vmul.f32 %v852_v63, %v1648_v56  ;;  %v710_v55 = vadd.f32 %v709_v24, %v707_v54  ;;  %v718_v47 = vmul.f32 %v717_v21, %v1993_v14 }
 0x14b   :  { %s2109_s10 = sld [smem:[#allocation2 + $0xa9]]  ;;  %v783_v6 = vadd.f32 %v782_v52, %v780_v60  ;;  %v855_v45 = vstv %s2081_s27  ;;  %v848_v31 = vadd.f32 %v847_v13, %v845_v33  ;;  %v794_v24 = vmul.f32 %v793_v9, %v1832_v48 }
 0x14c   :  { %s2114_s16 = sld [smem:[#allocation2 + $0xe0]]  ;;  %v796_v1 = vstv %s2085_s26  ;;  %v856_v41 = vmul.f32 %v855_v45, %v1653_v30  ;;  %v713_v56 = vadd.f32 %v712_v8, %v710_v55 }
 0x14d   :  { %s2119_s23 = sld [smem:[#allocation2 + $0xac]]  ;;  %v786_v37 = vadd.f32 %v785_v10, %v783_v6  ;;  %v858_v59 = vstv %s2090_s30  ;;  %v851_v32 = vadd.f32 %v850_v58, %v848_v31  ;;  %v797_v29 = vmul.f32 %v796_v1, %v1834_v36  ;;  %s1248_s30 = smov [#allocation7]  }
 0x14e   :  { %s2124_s4 = sld [smem:[#allocation2 + $0xd2]]  ;;  %v799_v39 = vstv %s2094_s12  ;;  %v859_v50 = vmul.f32 %v858_v59, %v1659_v61  ;;  %v716_v30 = vadd.f32 %v715_v22, %v713_v56  ;;  %s931_s12 = sshll.u32 %s1248_s30, 4  ;;  %s932_s12 = int_to_ptr.vmem [resolvable:$true] %s931_s12 }
 0x14f   :  { %s2129_s25 = sld [smem:[#allocation2 + $0xaf]]  ;;  %v789_v26 = vadd.f32 %v788_v28, %v786_v37  ;;  %v861_v4 = vstv %s2099_s3  ;;  %v854_v34 = vadd.f32 %v853_v25, %v851_v32  ;;  %v800_v42 = vmul.f32 %v799_v39, %v1859_v15 }
 0x150   :  { %s2133_s20 = sld [smem:[#allocation2 + $0xd5]]  ;;  %v802_v7 = vstv %s2104_s7  ;;  %v862_v53 = vmul.f32 %v861_v4, %v1661_v62  ;;  %v719_v61 = vadd.f32 %v718_v47, %v716_v30 }
 0x151   :  { %s2138_s18 = sld [smem:[#allocation2 + $0xb2]]  ;;  %v792_v43 = vadd.f32 %v791_v2, %v789_v26  ;;  %v864_v44 = vstv %s2109_s10  ;;  %v857_v52 = vadd.f32 %v856_v41, %v854_v34  ;;  %v803_v62 = vmul.f32 %v802_v7, %v1861_v18 }
 0x152   :  { %s2142_s24 = sld [smem:[#allocation2 + $0xd8]]  ;;  %v720_v8 = vstv %s2114_s16  ;;  %v865_v60 = vmul.f32 %v864_v44, %v1666_v3 }
 0x153   :  { %s2146_s1 = sld [smem:[#allocation2 + $0xb5]]  ;;  %v795_v49 = vadd.f32 %v794_v24, %v792_v43  ;;  %v867_v57 = vstv %s2119_s23  ;;  %v860_v51 = vadd.f32 %v859_v50, %v857_v52  ;;  %v721_v10 = vadd.f32 %v720_v8, %v719_v61  ;;  %s2346_s23 = smov 2  }
 0x154   :  { %s2150_s28 = sld [smem:[#allocation2 + $0xdb]]  ;;  %v805_v13 = vstv %s2124_s4  ;;  %v868_v58 = vmul.f32 %v867_v57, %v1678_v12  ;;  %s2347_s4 = smov 32  }
 0x155   :  { %s2155_s19 = sld [smem:[#allocation2 + $0xb8]]  ;;  %v798_v63 = vadd.f32 %v797_v29, %v795_v49  ;;  %v870_v21 = vstv %s2129_s25  ;;  %v863_v33 = vadd.f32 %v862_v53, %v860_v51  ;;  %v722_v54 = vmax.f32 %v721_v10, 0.0 }
 0x156   :  { %s2159_s13 = sld [smem:[#allocation2 + $0xde]]  ;;  %v808_v5 = vstv %s2133_s20  ;;  %v806_v28 = vmul.f32 %v805_v13, %v1907_v23  ;;  %v871_v9 = vmul.f32 %v870_v21, %v1706_v40 }
 0x157   :  { %s2163_s9 = sld [smem:[#allocation2 + $0xbb]]  ;;  %v801_v6 = vadd.f32 %v800_v42, %v798_v63  ;;  %v873_v3 = vstv %s2138_s18  ;;  %v866_v22 = vadd.f32 %v865_v60, %v863_v33  ;;  %v723_v31 = vmin.f32 %v722_v54, 1.0 }
 0x158   :  { %s2169_s14 = sld [smem:[#allocation2 + $0xbe]]  ;;  %v811_v45 = vstv %s2142_s24  ;;  %v809_v55 = vmul.f32 %v808_v5, %v1913_v0  ;;  %v874_v59 = vmul.f32 %v873_v3, %v1795_v16 }
 0x159   :  { %s2175_s5 = sld [smem:[#allocation2 + $0xc1]]  ;;  %v804_v25 = vadd.f32 %v803_v62, %v801_v6  ;;  %v876_v12 = vstv %s2146_s1  ;;  %v869_v2 = vadd.f32 %v868_v58, %v866_v22  ;;  %724 = vst [vmem:[#allocation7] sm:$0x3] %v723_v31  ;;  %v812_v40 = vmul.f32 %v811_v45, %v1960_v46 }
 0x15a   :  { %s2179_s17 = sld [smem:[#allocation2 + $0xe1]]  ;;  %v814_v37 = vstv %s2150_s28  ;;  %v877_v56 = vmul.f32 %v876_v12, %v1797_v17 }
 0x15b   :  { %s2183_s6 = sld [smem:[#allocation2 + $0xc4]]  ;;  %v807_v47 = vadd.f32 %v806_v28, %v804_v25  ;;  %v879_v1 = vstv %s2155_s19  ;;  %v872_v41 = vadd.f32 %v871_v9, %v869_v2  ;;  %v815_v24 = vmul.f32 %v814_v37, %v1991_v11 }
 0x15c   :  { %v817_v32 = vstv %s2159_s13  ;;  %s2189_s22 = sld [smem:[#allocation2 + $0xc7]]  ;;  %v880_v39 = vmul.f32 %v879_v1, %v1799_v19 }
 0x15d   :  { %v810_v26 = vadd.f32 %v809_v55, %v807_v47  ;;  %v882_v16 = vstv %s2163_s9  ;;  %v875_v4 = vadd.f32 %v874_v59, %v872_v41  ;;  %s2194_s8 = sld [smem:[#allocation2 + $0xca]]  ;;  %v818_v50 = vmul.f32 %v817_v32, %v1993_v14 }
 0x15e   :  { %v885_v30 = vstv %s2169_s14  ;;  %v883_v17 = vmul.f32 %v882_v16, %v1803_v20  ;;  %s1163_s0 = sld [smem:[#allocation2 + $0xcd]] }
 0x15f   :  { %v813_v34 = vadd.f32 %v812_v40, %v810_v26  ;;  %v878_v43 = vadd.f32 %v877_v56, %v875_v4  ;;  %v888_v44 = vstv %s2175_s5  ;;  %v886_v52 = vmul.f32 %v885_v30, %v1814_v35  ;;  %s1164_s29 = sld [smem:[#allocation2 + $0xd0]] }
 0x160   :  { %v820_v8 = vstv %s2179_s17  ;;  %v889_v49 = vmul.f32 %v888_v44, %v1816_v27  ;;  %s1165_s2 = sld [smem:[#allocation2 + $0xd3]] }
 0x161   :  { %v816_v29 = vadd.f32 %v815_v24, %v813_v34  ;;  %v881_v7 = vadd.f32 %v880_v39, %v878_v43  ;;  %v891_v53 = vstv %s2183_s6  ;;  %s1166_s21 = sld [smem:[#allocation2 + $0xd6]] }
 0x162   :  { %v894_v57 = vstv %s2189_s22  ;;  %v892_v20 = vmul.f32 %v891_v53, %v1820_v38  ;;  %s1167_s15 = sld [smem:[#allocation2 + $0xd9]] }
 0x163   :  { %v819_v19 = vadd.f32 %v818_v50, %v816_v29  ;;  %v884_v61 = vadd.f32 %v883_v17, %v881_v7  ;;  %v897_v60 = vstv %s2194_s8  ;;  %v895_v63 = vmul.f32 %v894_v57, %v1832_v48  ;;  %s1168_s11 = sld [smem:[#allocation2 + $0xdc]] }
 0x164   :  { %v900_v62 = vstv %s1163_s0  ;;  %v898_v5 = vmul.f32 %v897_v60, %v1834_v36  ;;  %s1169_s27 = sld [smem:[#allocation2 + $0xdf]] }
 0x165   :  { %v821_v42 = vadd.f32 %v820_v8, %v819_v19  ;;  %v887_v13 = vadd.f32 %v886_v52, %v884_v61  ;;  %v903_v27 = vstv %s1164_s29  ;;  %v901_v58 = vmul.f32 %v900_v62, %v1859_v15  ;;  %s1172_s26 = sld [smem:[#allocation2 + $0xe2]] }
 0x166   :  { %v906_v38 = vstv %s1165_s2  ;;  %v904_v6 = vmul.f32 %v903_v27, %v1861_v18  ;;  %s2345_s10 = sld [smem:[#allocation51_spill]] }
 0x167   :  { %v822_v51 = vmax.f32 %v821_v42, 0.0  ;;  %v890_v10 = vadd.f32 %v889_v49, %v887_v13  ;;  %v909_v28 = vstv %s1166_s21  ;;  %v907_v48 = vmul.f32 %v906_v38, %v1907_v23 }
 0x168   :  { %v912_v45 = vstv %s1167_s15  ;;  %v910_v9 = vmul.f32 %v909_v28, %v1913_v0 }
 0x169   :  { %v823_v35 = vmin.f32 %v822_v51, 1.0  ;;  %v893_v21 = vadd.f32 %v892_v20, %v890_v10  ;;  %v915_v36 = vstv %s1168_s11  ;;  %v913_v25 = vmul.f32 %v912_v45, %v1960_v46 }
 0x16a   :  { %v918_v55 = vstv %s1169_s27  ;;  %v916_v12 = vmul.f32 %v915_v36, %v1991_v11 }
 0x16b   :  { %825 = vst [vmem:[#allocation7 + $0x2] sm:$0x3] %v823_v35  ;;  %v896_v33 = vadd.f32 %v895_v63, %v893_v21  ;;  %v919_v18 = vmul.f32 %v918_v55, %v1993_v14  ;;  %v921_v59 = vstv %s1172_s26 }
 0x16c   :  { %s933_s16 = sshll.u32 %s2345_s10, 4  ;;  %s934_s16 = int_to_ptr.hbm [resolvable:$true] %s933_s16 }
 0x16d   :  { %v899_v54 = vadd.f32 %v898_v5, %v896_v33 }
 0x16f   :  { %v902_v3 = vadd.f32 %v901_v58, %v899_v54 }
 0x171   :  { %v905_v22 = vadd.f32 %v904_v6, %v902_v3 }
 0x173   :  { %v908_v31 = vadd.f32 %v907_v48, %v905_v22 }
 0x175   :  { %v911_v15 = vadd.f32 %v910_v9, %v908_v31 }
 0x177   :  { %v914_v37 = vadd.f32 %v913_v25, %v911_v15 }
 0x179   :  { %v917_v2 = vadd.f32 %v916_v12, %v914_v37 }
 0x17b   :  { %v920_v47 = vadd.f32 %v919_v18, %v917_v2 }
 0x17d   :  { %v922_v23 = vadd.f32 %v921_v59, %v920_v47 }
 0x17f   :  { %v923_v0 = vmax.f32 %v922_v23, 0.0 }
 0x181   :  { %v924_v40 = vmin.f32 %v923_v0, 1.0 }
 0x183   :  { %926 = vst [vmem:[#allocation7 + $0x4] sm:$0x3] %v924_v40 }
 0x184   :  { %939 = dma.vmem_to_hbm [thread:$0]  %s932_s12, 96, %s934_s16, [#allocation4], %s2347_s4, %s2347_s4, %s2346_s23  }
 0x185   :  { %1242 = dma.done.wait [#allocation4], 96  }
 0x186   :  { %1243 = vsyncadd [#allocation4], 4294967200 }
 0x187   :  { %944 = vsyncpa [#allocation3], 1 }
 0x188   :  { %945 = vsyncpa [#allocation4], 1 }
 0x189   :  { %946 = vsyncpa [#allocation5], 1 }

</bundles_post_ra>
